<compile_context>
chip_gen: v6e
topology: v6e:2x2x1
jax: 0.10.0
libtpu: 0.0.40
codegen_flags: <defaults>
</compile_context>

<pallas_src>
import math

import jax
import jax.numpy as jnp
from jax import lax
from jax.experimental import pallas as pl
from jax.experimental.pallas import tpu as pltpu

_INV_SQRT2 = 1.0 / math.sqrt(2.0)
_LANE = 128


def _round_up(x, m):
    return ((x + m - 1) // m) * m


def _round_down(x, m):
    return (x // m) * m


def _make_mlp_channel_kernel(approximate_gelu):
    def kernel(x_ref, w1_ref, b1_ref, w2_ref, b2_ref, o_ref):
        # x_ref:  (C, ts)   channels-first, spatial lane-dense
        # w1_ref: (M, C)    b1_ref: (M, 1)   (torch Conv3d weight, squeezed)
        # w2_ref: (C, M)    b2_ref: (C, 1)
        # o_ref:  (C, ts)
        x = x_ref[...]

        # fc1: pointwise conv == channel matmul; f32 accumulation on the MXU.
        h = jnp.dot(w1_ref[...], x, preferred_element_type=jnp.float32) + b1_ref[...]

        if approximate_gelu:
            # Perf option (tanh goes to the EUP slot); slight numeric deviation
            # from PyTorch's exact-erf nn.GELU().
            h = jax.nn.gelu(h, approximate=True)
        else:
            # Exact GELU (nn.GELU default): 0.5 * h * (1 + erf(h / sqrt(2)))
            h = 0.5 * h * (1.0 + lax.erf(h * _INV_SQRT2))

        # fc2
        o = jnp.dot(w2_ref[...], h, preferred_element_type=jnp.float32) + b2_ref[...]
        o_ref[...] = o.astype(o_ref.dtype)

    return kernel


def _vmem_bytes(c, m, tile_s, bpe, w_elems):
    in_b = c * tile_s * bpe            # x tile
    out_b = c * tile_s * bpe           # out tile
    hid_b = m * tile_s * 4             # f32 hidden + activation temporaries
    return 2 * in_b + 2 * out_b + 3 * hid_b + 4 * w_elems * bpe + (2 << 20)


def mlp_channel_pallas(x_ncdhw, w1, b1, w2, b2, *, ts=65536, approximate_gelu=False):
    """MlpChannel forward (pointwise-conv MLP over channels).

    x_ncdhw: (N, C, D, H, W) float32
    w1: (M, C)  == torch Conv3d(C, M, 1).weight.squeeze()
    b1: (M,)
    w2: (C, M)  == torch Conv3d(M, C, 1).weight.squeeze()
    b2: (C,)
    """
    n, c, d, h, w = x_ncdhw.shape
    m = w1.shape[0]
    s = d * h * w

    x3 = x_ncdhw.reshape(n, c, s)      # free reshape, no transpose through HBM
    bpe = x3.dtype.itemsize
    w_elems = w1.size + w2.size + m + c

    # Generation-aware VMEM cap: ~0.75x physical (96 MiB on v5e/v6e, 48 MiB on v7x);
    # fall back to a v7x-safe 48 MiB if the query is unavailable.
    try:
        cap = int(0.75 * pltpu.get_tpu_info().vmem_capacity_bytes)
    except Exception:
        cap = 48 << 20
    cap = max(cap, 16 << 20)

    # ---- spatial tile selection (lane-dense, 128-aligned) -------------------
    if s < _LANE:
        tile_s = s                     # tiny spatial extent: single ragged block
    else:
        tile_s = max(_LANE, _round_down(min(ts, s), _LANE))
        if n == 1:
            # Keep both v7x TensorCores busy: guarantee >= 2 spatial tiles.
            half = max(_LANE, _round_up(pl.cdiv(s, 2), _LANE))
            tile_s = min(tile_s, half)
        # Shrink the tile if the double-buffered footprint would blow the cap.
        while tile_s > _LANE and _vmem_bytes(c, m, tile_s, bpe, w_elems) > cap:
            tile_s = max(_LANE, _round_down(tile_s // 2, _LANE))

    grid = (n, pl.cdiv(s, tile_s))     # boundary block (if any) is masked by Pallas

    vmem_limit = min(max(_vmem_bytes(c, m, tile_s, bpe, w_elems), 8 << 20), cap)

    b1_2d = b1.reshape(m, 1)
    b2_2d = b2.reshape(c, 1)

    kernel = _make_mlp_channel_kernel(approximate_gelu)

    out3 = pl.pallas_call(
        kernel,
        out_shape=jax.ShapeDtypeStruct((n, c, s), x3.dtype),
        grid_spec=pltpu.PrefetchScalarGridSpec(
            num_scalar_prefetch=0,
            grid=grid,
            in_specs=[
                pl.BlockSpec((None, c, tile_s), lambda b, j: (b, 0, j)),  # x tile
                pl.BlockSpec((m, c), lambda b, j: (0, 0)),                # W1 (resident)
                pl.BlockSpec((m, 1), lambda b, j: (0, 0)),                # b1
                pl.BlockSpec((c, m), lambda b, j: (0, 0)),                # W2
                pl.BlockSpec((c, 1), lambda b, j: (0, 0)),                # b2
            ],
            out_specs=pl.BlockSpec((None, c, tile_s), lambda b, j: (b, 0, j)),
        ),
        compiler_params=pltpu.CompilerParams(
            dimension_semantics=("parallel", "parallel"),
            vmem_limit_bytes=vmem_limit,
        ),
    )(x3, w1, b1_2d, w2, b2_2d)

    return out3.reshape(n, c, d, h, w)


def reference_mlp_channel(x_ncdhw, w1, b1, w2, b2):
    # pure-JAX reference of the PyTorch forward (shallow=True -> exact GELU)
    n, c, d, h, w = x_ncdhw.shape
    x3 = x_ncdhw.reshape(n, c, -1)
    hmid = jnp.einsum("mc,ncs->nms", w1, x3) + b1[None, :, None]
    hmid = 0.5 * hmid * (1.0 + lax.erf(hmid * _INV_SQRT2))
    o = jnp.einsum("cm,nms->ncs", w2, hmid) + b2[None, :, None]
    return o.reshape(n, c, d, h, w)


if __name__ == "__main__":
    key = jax.random.PRNGKey(0)
    k_x, k_w1, k_b1, k_w2, k_b2, k_x2 = jax.random.split(key, 6)

    # MlpChannel(hidden_size=8, mlp_dim=32), input (N=2, C=8, D=H=W=16)
    hidden_size, mlp_dim = 8, 32
    N, D, H, W = 2, 16, 16, 16

    x = jax.random.normal(k_x, (N, hidden_size, D, H, W), dtype=jnp.float32)
    # torch Conv3d(hidden, mlp, 1).weight has shape (mlp, hidden, 1, 1, 1);
    # we carry the squeezed (mlp, hidden) matrix directly.
    w1 = jax.random.normal(k_w1, (mlp_dim, hidden_size), dtype=jnp.float32) * 0.1
    b1 = jax.random.normal(k_b1, (mlp_dim,), dtype=jnp.float32) * 0.1
    w2 = jax.random.normal(k_w2, (hidden_size, mlp_dim), dtype=jnp.float32) * 0.1
    b2 = jax.random.normal(k_b2, (hidden_size,), dtype=jnp.float32) * 0.1

    ref = reference_mlp_channel(x, w1, b1, w2, b2)

    # 1) default large-tile path: S=4096 <= ts -> grid (2, 1), one tile per batch
    out = jax.block_until_ready(mlp_channel_pallas(x, w1, b1, w2, b2))
    assert out.shape == (N, hidden_size, D, H, W)
    assert jnp.allclose(out, ref, atol=1e-5, rtol=1e-5), "mismatch (default path)"

    # 2) tiled spatial path: grid (2, 4), lane-dense 1024-wide tiles
    out_t = jax.block_until_ready(mlp_channel_pallas(x, w1, b1, w2, b2, ts=1024))
    assert jnp.allclose(out_t, ref, atol=1e-5, rtol=1e-5), "mismatch (tiled path)"

    # 3) N=1: spatial axis split into >= 2 tiles (v7x two-TensorCore path)
    x1 = x[:1]
    out1 = jax.block_until_ready(mlp_channel_pallas(x1, w1, b1, w2, b2))
    assert jnp.allclose(out1, ref[:1], atol=1e-5, rtol=1e-5), "mismatch (N=1 split path)"

    # 4) ragged spatial extent (S=210): no pad/slice, boundary block masked by Pallas
    x2 = jax.random.normal(k_x2, (1, hidden_size, 5, 6, 7), dtype=jnp.float32)
    out2 = jax.block_until_ready(mlp_channel_pallas(x2, w1, b1, w2, b2))
    ref2 = reference_mlp_channel(x2, w1, b1, w2, b2)
    assert jnp.allclose(out2, ref2, atol=1e-5, rtol=1e-5), "mismatch (ragged path)"
    assert bool(jnp.all(jnp.isfinite(out2))), "non-finite values (ragged path)"

    # 5) opt-in tanh-approx GELU fast path (numerics differ from exact erf at ~1e-3)
    out_a = jax.block_until_ready(
        mlp_channel_pallas(x, w1, b1, w2, b2, approximate_gelu=True))
    assert jnp.allclose(out_a, ref, atol=5e-2, rtol=5e-2), "mismatch (approx-gelu path)"

    print("KERNEL_OK")
</pallas_src>

<mosaic_0001>
module attributes {stable_mosaic.version = 11 : i64} {
  func.func @kernel(%arg0: i32, %arg1: i32, %arg2: memref<1x8x4096xf32, #tpu.memory_space<vmem>>, %arg3: memref<32x8xf32, #tpu.memory_space<vmem>>, %arg4: memref<32x1xf32, #tpu.memory_space<vmem>>, %arg5: memref<8x32xf32, #tpu.memory_space<vmem>>, %arg6: memref<8x1xf32, #tpu.memory_space<vmem>>, %arg7: memref<1x8x4096xf32, #tpu.memory_space<vmem>>) attributes {dimension_semantics = [#tpu.dimension_semantics<parallel>, #tpu.dimension_semantics<parallel>], iteration_bounds = array<i64: 2, 1>, scalar_prefetch = 0 : i64, scratch_operands = 0 : i64, tpu.core_type = #tpu.core_type<tc>, window_params = [{transform_indices = @transform_0, window_bounds = array<i64: 1, 8, 4096>}, {pipeline_mode = #tpu.pipeline_mode<synchronous>, transform_indices = @transform_1, window_bounds = array<i64: 32, 8>}, {pipeline_mode = #tpu.pipeline_mode<synchronous>, transform_indices = @transform_2, window_bounds = array<i64: 32, 1>}, {pipeline_mode = #tpu.pipeline_mode<synchronous>, transform_indices = @transform_3, window_bounds = array<i64: 8, 32>}, {pipeline_mode = #tpu.pipeline_mode<synchronous>, transform_indices = @transform_4, window_bounds = array<i64: 8, 1>}, {transform_indices = @transform_5, window_bounds = array<i64: 1, 8, 4096>}]} {
    %c0 = arith.constant 0 : index
    %c0_0 = arith.constant 0 : index
    %c0_1 = arith.constant 0 : index
    %0 = vector.load %arg2[%c0, %c0_0, %c0_1] : memref<1x8x4096xf32, #tpu.memory_space<vmem>>, vector<1x8x4096xf32>
    %1 = vector.shape_cast %0 : vector<1x8x4096xf32> to vector<8x4096xf32>
    %c0_2 = arith.constant 0 : index
    %c0_3 = arith.constant 0 : index
    %2 = vector.load %arg3[%c0_2, %c0_3] : memref<32x8xf32, #tpu.memory_space<vmem>>, vector<32x8xf32>
    %cst = arith.constant dense<0.000000e+00> : vector<32x4096xf32>
    %3 = tpu.matmul %2, %1, %cst {dimension_numbers = #tpu.dot_dimension_numbers<[1], [0], [0], [1], [0, 0, 1, 1], [], []>} : vector<32x8xf32>, vector<8x4096xf32>, vector<32x4096xf32> -> vector<32x4096xf32>
    %c0_4 = arith.constant 0 : index
    %c0_5 = arith.constant 0 : index
    %4 = vector.load %arg4[%c0_4, %c0_5] : memref<32x1xf32, #tpu.memory_space<vmem>>, vector<32x1xf32>
    %5 = vector.broadcast %4 : vector<32x1xf32> to vector<32x4096xf32>
    %6 = arith.addf %3, %5 : vector<32x4096xf32>
    %cst_6 = arith.constant 5.000000e-01 : f32
    %7 = vector.broadcast %cst_6 : f32 to vector<32x4096xf32>
    %8 = arith.mulf %7, %6 : vector<32x4096xf32>
    %cst_7 = arith.constant 0.707106769 : f32
    %9 = vector.broadcast %cst_7 : f32 to vector<32x4096xf32>
    %10 = arith.mulf %6, %9 : vector<32x4096xf32>
    %11 = math.erf %10 : vector<32x4096xf32>
    %cst_8 = arith.constant 1.000000e+00 : f32
    %12 = vector.broadcast %cst_8 : f32 to vector<32x4096xf32>
    %13 = arith.addf %12, %11 : vector<32x4096xf32>
    %14 = arith.mulf %8, %13 : vector<32x4096xf32>
    %c0_9 = arith.constant 0 : index
    %c0_10 = arith.constant 0 : index
    %15 = vector.load %arg5[%c0_9, %c0_10] : memref<8x32xf32, #tpu.memory_space<vmem>>, vector<8x32xf32>
    %cst_11 = arith.constant dense<0.000000e+00> : vector<8x4096xf32>
    %16 = tpu.matmul %15, %14, %cst_11 {dimension_numbers = #tpu.dot_dimension_numbers<[1], [0], [0], [1], [0, 0, 1, 1], [], []>} : vector<8x32xf32>, vector<32x4096xf32>, vector<8x4096xf32> -> vector<8x4096xf32>
    %c0_12 = arith.constant 0 : index
    %c0_13 = arith.constant 0 : index
    %17 = vector.load %arg6[%c0_12, %c0_13] : memref<8x1xf32, #tpu.memory_space<vmem>>, vector<8x1xf32>
    %18 = vector.broadcast %17 : vector<8x1xf32> to vector<8x4096xf32>
    %19 = arith.addf %16, %18 : vector<8x4096xf32>
    %c0_14 = arith.constant 0 : index
    %c0_15 = arith.constant 0 : index
    %c0_16 = arith.constant 0 : index
    %20 = vector.load %arg7[%c0_14, %c0_15, %c0_16] : memref<1x8x4096xf32, #tpu.memory_space<vmem>>, vector<1x8x4096xf32>
    %21 = vector.shape_cast %20 : vector<1x8x4096xf32> to vector<8x4096xf32>
    %22 = vector.shape_cast %19 : vector<8x4096xf32> to vector<1x8x4096xf32>
    tpu.vector_store %arg7[%c0_14, %c0_15, %c0_16], %22 {strides = array<i32>} : memref<1x8x4096xf32, #tpu.memory_space<vmem>>, vector<1x8x4096xf32>,
    return
  }
  func.func @transform_0(%arg0: i32, %arg1: i32) -> (i32, i32, i32) {
    %c0_i32 = arith.constant 0 : i32
    %c0_i32_0 = arith.constant 0 : i32
    return %arg0, %c0_i32, %arg1 : i32, i32, i32
  }
  func.func @transform_1(%arg0: i32, %arg1: i32) -> (i32, i32) {
    %c0_i32 = arith.constant 0 : i32
    %c0_i32_0 = arith.constant 0 : i32
    %c0_i32_1 = arith.constant 0 : i32
    return %c0_i32, %c0_i32_0 : i32, i32
  }
  func.func @transform_2(%arg0: i32, %arg1: i32) -> (i32, i32) {
    %c0_i32 = arith.constant 0 : i32
    %c0_i32_0 = arith.constant 0 : i32
    %c0_i32_1 = arith.constant 0 : i32
    return %c0_i32, %c0_i32_0 : i32, i32
  }
  func.func @transform_3(%arg0: i32, %arg1: i32) -> (i32, i32) {
    %c0_i32 = arith.constant 0 : i32
    %c0_i32_0 = arith.constant 0 : i32
    %c0_i32_1 = arith.constant 0 : i32
    return %c0_i32, %c0_i32_0 : i32, i32
  }
  func.func @transform_4(%arg0: i32, %arg1: i32) -> (i32, i32) {
    %c0_i32 = arith.constant 0 : i32
    %c0_i32_0 = arith.constant 0 : i32
    %c0_i32_1 = arith.constant 0 : i32
    return %c0_i32, %c0_i32_0 : i32, i32
  }
  func.func @transform_5(%arg0: i32, %arg1: i32) -> (i32, i32, i32) {
    %c0_i32 = arith.constant 0 : i32
    %c0_i32_0 = arith.constant 0 : i32
    return %arg0, %c0_i32, %arg1 : i32, i32, i32
  }
}

</mosaic_0001>

<bundles_post_ra>
// kernel: tpu_custom_call.1
= control target key start
LH: loop header
LB: loop body
LE: loop exit
PB: predicated region body
PF: predicated region fallthrough
CT: control target
= control target key end

     0   :  { %10 = vsyncpa [#allocation3], 0  ;;  %s5930_s0 = inlined_call_operand.hbm [shape: f32[2,8,4096], index: 0, kind: input, shape index: {}]   ;;  %s5931_s1 = inlined_call_operand.vmem [shape: f32[32,8], index: 1, kind: input, shape index: {}]   ;;  %s5932_s2 = inlined_call_operand.vmem [shape: f32[32,1], index: 2, kind: input, shape index: {}]   ;;  %s5933_s3 = inlined_call_operand.vmem [shape: f32[8,32], index: 3, kind: input, shape index: {}]   ;;  %s5934_s4 = inlined_call_operand.vmem [shape: f32[8,1], index: 4, kind: input, shape index: {}]   ;;  %s5935_s5 = inlined_call_operand.hbm [shape: f32[2,8,4096], index: 5, kind: output, shape index: {}]  }
   0x1   :  { %12 = vsyncpa [#allocation3 + $0x1], 0 }
   0x2   :  { %13 = vsyncpa [#allocation4], 0 }
   0x3   :  { %15 = vsyncpa [#allocation4 + $0x1], 0  ;;  %s4242_s18 = smov 0   ;;  %s4244_s19 = smov 0  }
   0x4   :  { %s4246_s20 = smov 0   ;;  %s4248_s21 = smov 0  }
   0x5   :  { %s4250_s22 = smov 0   ;;  %s4252_s23 = smov 0  }
   0x6 LB: > { %s3678_s24 = sadd.s32 4294967295, %s4206_s23   ;;  %s3679_s25 = sadd.s32 4294967294, %s4206_s23   ;;  %s4206_s23 = sphi %s4252_s23, %s21_s23   ;;  %s4202_s22 = sphi %s4250_s22, %s6068_s22   ;;  %s4198_s21 = sphi %s4248_s21, %s6067_s21   ;;  %s4194_s20 = sphi %s4246_s20, %s6066_s20   ;;  %s4190_s19 = sphi %s4244_s19, %s6065_s19   ;;  %s4186_s18 = sphi %s4242_s18, %s6064_s18  }
   0x7   : > { %s33_s26 = sadd.s32 1, %s4202_s22  ;;  %s42_s27 = sadd.s32 1, %s4194_s20 }
   0x8   : > { %p35_p0 = scmp.ge.s32.totalorder %s33_s26, 2  ;;  %p49_p1 = scmp.ne.s32.totalorder %s4194_s20, %s4190_s19 }
   0x9   : > { %p50_p2 = scmp.eq.s32.totalorder %s4206_s23, 0  ;;  %p55_p3 = scmp.ne.s32.totalorder %s4190_s19, %s4186_s18 }
   0xa   : > { %s6070_s26 = smov (%p35_p0, %s33_s26), 0  ;;  %p56_p5 = scmp.eq.s32.totalorder %s3678_s24, 0 }
   0xb   : > { %p4283_p4 = por %p50_p2, %p49_p1  ;;  %s37_s29 = ssub.s32 %s4202_s22, %s6070_s26 }
   0xc   : > { %p165_p6 = scmp.eq.s32.totalorder %s3678_s24, 1  ;;  %p40_p7 = scmp.eq.s32.totalorder %s37_s29, 0 }
   0xd   : > { %p4289_p8 = por %p56_p5, %p55_p3  ;;  %p171_p10 = scmp.eq.s32.totalorder %s3679_s25, 1 }
   0xe   : > { %p4293_p9 = por %p165_p6, %p49_p1  ;;  %p3787_p13 = scmp.lt.s32.totalorder %s4206_s23, 2 }
   0xf   : > { %s4298_s7 = scalar_select %p40_p7, %s4194_s20, %s42_s27  }
  0x10   : > { %p4300_p11 = por %p171_p10, %p55_p3  ;;  %s203_s9 = sand.u32 1, %s4194_s20  }
  0x11   : > { %s3682_s10 = sshll.u32 %s203_s9, 8  ;;  %s3773_s11 = sshll.u32 %s4202_s22, 12 }
  0x12   : > { %s5945_s8 = scalar_select %p4300_p11, 1, 0 }
  0x13   : > { %s215_s14 = scalar_lea.hbm %s5930_s0, %s3773_s11  ;;  %s207_s15 = scalar_lea.vmem [#allocation2], %s3682_s10 }
  0x14   : > { %s217_s16 = sshll.u32 %s207_s15, 4  ;;  %p4313_p0 = pnand %p3787_p13, %p4283_p4  ;;  %s218_s16 = int_to_ptr.vmem [resolvable:$true] %s217_s16 }
  0x15   : > { %p3685_p1 = scmp.ge.s32.totalorder %s4206_s23, 1  ;;  %p222_p2 = scmp.lt.s32.totalorder %s4206_s23, 3 }
  0x16   : > { %s204_s24 = scalar_lea.sflag [#allocation3], %s203_s9  ;;  %p4100_p3 = pneg %p4313_p0 }
  0x17   : > { %s4111_s25 = scalar_lea.vmem %s218_s16, 4096  ;;  %s4208_s27 = smov [#allocation2]  }
  0x18   : > { %p4112_p5 = scmp.ne.s32.totalorder %s218_s16, %s4111_s25  ;;  %s4116_s29 = sshll.u32 %s4208_s27, 4  ;;  %s4117_s29 = int_to_ptr.vmem [resolvable:$false] %s4116_s29 }
  0x19   : > { %s4118_s10 = scalar_lea.vmem %s4117_s29, 8192  ;;  %p4119_p10 = scmp.lt.s32.totalorder %s218_s16, %s4117_s29 }
  0x1a   : > { %p4114_p6 = pnand %p4112_p5, %p4100_p3  ;;  %p4120_p12 = scmp.lt.s32.totalorder %s4118_s10, %s4111_s25 }
  0x1c   : > { %p4115_p7 = pneg %p4114_p6  ;;  %p4121_p4 = por %p4120_p12, %p4119_p10 }
  0x1e   : > { %p4122_p13 = pnand %p4121_p4, %p4115_p7 }
  0x20   : > { %4125 = shalt.err (!%p4122_p13)
}
  0x21   : > { %3782 = dma.hbm_to_vmem [thread:$0]  (!%p4313_p0), %s215_s14, 4096, %s218_s16, %s204_s24  }
  0x22   : > { %p223_p11 = pnand %p3685_p1, %p222_p2 }
  0x24   : > { %226 = sbr.rel (%p223_p11) target bundleno = 662 (0x296), region = 40 }
  0x29   : > { %s4328_s28 = sand.u32 1, %s4190_s19  }
  0x2a   : > { %s3686_s9 = sshll.u32 %s4328_s28, 8  ;;  %s229_s11 = scalar_lea.sflag [#allocation3], %s4328_s28 }
  0x2b   : > { %s4334_s12 = scalar_lea.vmem [#allocation2], %s3686_s9 }
  0x2c   : > { %4177 = dma.done.wait (%p4289_p8), %s229_s11, 4096  }
  0x2d   : > { %4179 = vsyncadd (%p4289_p8), %s229_s11, 4294963200  ;;  %v5936_v0 = vmov 0.0   ;;  %v4210_v1 = vmov 0   ;;  %v262_v2 = vld [vmem:[%s4334_s12 + $0x8] sm:$0xff]  ;;  %v264_v3 = vld [vmem:[%s4334_s12 + $0x18] sm:$0xff]  ;;  %vm321_vm0 = vcmask 64512  }
  0x2e   : > { %398 = vmatprep.mubr.f32.mxu0 %v5936_v0  ;;  %487 = vmatprep.mubr.f32.mxu1 %v5936_v0  ;;  %v261_v4 = vld [vmem:[%s4334_s12] sm:$0xff]  ;;  %v263_v5 = vld [vmem:[%s4334_s12 + $0x10] sm:$0xff]  ;;  %v266_v7 = vld [vmem:[%s4334_s12 + $0x28] sm:$0xff]  ;;  %vm2405_vm1 = vcmask 261120   ;;  %s5819_s29 = scalar_lea.vmem [#allocation5], %s3686_s9  ;;  %s3774_s9 = sshll.u32 %s4198_s21, 12 }
  0x2f   : > { %3840 = vset.pattern.permute.xlu1 %v4210_v1  ;;  %3839 = vset.pattern.permute.xlu0 %v4210_v1  ;;  %v4349_v6 = vld [vmem:[%s5931_s1] sm:$0xff]  ;;  %v268_v8 = vld [vmem:[%s4334_s12 + $0x38] sm:$0xff]  ;;  %v267_v10 = vld [vmem:[%s4334_s12 + $0x30] sm:$0xff]  ;;  %s3594_s10 = sshll.u32 %s5819_s29, 4  ;;  %s5886_s13 = scalar_lea.hbm %s5935_s5, %s3774_s9  ;;  %s3595_s10 = int_to_ptr.vmem [resolvable:$true] %s3594_s10 }
  0x30   : > { %364 = vmatprep.subr.mxu0 %v262_v2  ;;  %453 = vmatprep.subr.mxu1 %v264_v3  ;;  %v265_v9 = vld [vmem:[%s4334_s12 + $0x20] sm:$0xff]  ;;  %v4362_v11 = vld [vmem:[%s5931_s1 + $0x8] sm:$0xff]  ;;  %v272_v13 = vld [vmem:[%s4334_s12 + $0x58] sm:$0xff]  ;;  %s3578_s21 = scalar_lea.sflag [#allocation4], %s4328_s28  ;;  %s4126_s14 = scalar_lea.vmem %s3595_s10, 4096 }
  0x31   : > { %365 = vmatpush1.msra.mxu0 %v261_v4  ;;  %454 = vmatpush1.msra.mxu1 %v263_v5  ;;  %v270_v12 = vld [vmem:[%s4334_s12 + $0x48] sm:$0xff]  ;;  %v4377_v14 = vld [vmem:[%s5931_s1 + $0x10] sm:$0xff]  ;;  %v300_v16 = vld [vmem:[%s5932_s2 + $0x18] sm:$0xff]  ;;  %p4127_p8 = scmp.ne.s32.totalorder %s3595_s10, %s4126_s14  ;;  %s4211_s15 = smov [#allocation5]  }
  0x32   : > { %3688 = vmatmul.mubr.msk.f32.vlgmr.msra.gmra.mxu0 %vm321_vm0, %v4349_v6  ;;  %3692 = vmatmul.mubr.msk.f32.vlgmr.msra.gmra.mxu1 %vm321_vm0, %v4349_v6  ;;  %v298_v15 = vld [vmem:[%s5932_s2 + $0x8] sm:$0xff]  ;;  %v297_v17 = vld [vmem:[%s5932_s2] sm:$0xff]  ;;  %v4397_v18 = vld [vmem:[%s5931_s1 + $0x18] sm:$0xff]  ;;  %s4130_s16 = sshll.u32 %s4211_s15, 4  ;;  %s4131_s16 = int_to_ptr.vmem [resolvable:$false] %s4130_s16 }
  0x33   : > { %542 = vmatprep.subr.mxu0 %v266_v7  ;;  %631 = vmatprep.subr.mxu1 %v268_v8  ;;  %v299_v19 = vld [vmem:[%s5932_s2 + $0x10] sm:$0xff]  ;;  %v269_v20 = vld [vmem:[%s4334_s12 + $0x40] sm:$0xff]  ;;  %v274_v22 = vld [vmem:[%s4334_s12 + $0x68] sm:$0xff]  ;;  %p4128_p11 = pnand %p4127_p8, %p4293_p9  ;;  %s4132_s17 = scalar_lea.vmem %s4131_s16, 8192 }
  0x34   : > { %543 = vmatpush1.msra.mxu0 %v265_v9  ;;  %632 = vmatpush1.msra.mxu1 %v267_v10  ;;  %v271_v21 = vld [vmem:[%s4334_s12 + $0x50] sm:$0xff]  ;;  %v276_v23 = vld [vmem:[%s4334_s12 + $0x78] sm:$0xff]  ;;  %v2399_v24 = vld [vmem:[%s5934_s4] sm:$0xff]  ;;  %p4133_p0 = scmp.lt.s32.totalorder %s3595_s10, %s4131_s16  ;;  %p4134_p1 = scmp.lt.s32.totalorder %s4132_s17, %s4126_s14 }
  0x35   : > { %404 = vmatprep.mubr.f32.mxu0 %v5936_v0  ;;  %493 = vmatprep.mubr.f32.mxu1 %v5936_v0  ;;  %v273_v25 = vld [vmem:[%s4334_s12 + $0x60] sm:$0xff]  ;;  %v275_v26 = vld [vmem:[%s4334_s12 + $0x70] sm:$0xff]  ;;  %v278_v27 = vld [vmem:[%s4334_s12 + $0x88] sm:$0xff]  ;;  %p4129_p12 = pneg %p4128_p11 }
  0x36   : > { %3689 = vmatmul.mubr.msk.f32.gmra.mxu0 %vm321_vm0, %v4362_v11  ;;  %3693 = vmatmul.mubr.msk.f32.gmra.mxu1 %vm321_vm0, %v4362_v11  ;;  %v280_v28 = vld [vmem:[%s4334_s12 + $0x98] sm:$0xff]  ;;  %v277_v29 = vld [vmem:[%s4334_s12 + $0x80] sm:$0xff]  ;;  %v279_v30 = vld [vmem:[%s4334_s12 + $0x90] sm:$0xff]  ;;  %p4135_p2 = por %p4134_p1, %p4133_p0 }
  0x37   : > { %410 = vmatprep.mubr.f32.mxu0 %v5936_v0  ;;  %499 = vmatprep.mubr.f32.mxu1 %v5936_v0  ;;  %v282_v31 = vld [vmem:[%s4334_s12 + $0xa8] sm:$0xff]  ;;  %v284_v32 = vld [vmem:[%s4334_s12 + $0xb8] sm:$0xff]  ;;  %v281_v33 = vld [vmem:[%s4334_s12 + $0xa0] sm:$0xff] }
  0x38   : > { %720 = vmatprep.subr.mxu0 %v270_v12  ;;  %809 = vmatprep.subr.mxu1 %v272_v13  ;;  %v283_v34 = vld [vmem:[%s4334_s12 + $0xb0] sm:$0xff]  ;;  %v286_v35 = vld [vmem:[%s4334_s12 + $0xc8] sm:$0xff]  ;;  %v288_v36 = vld [vmem:[%s4334_s12 + $0xd8] sm:$0xff]  ;;  %p4136_p3 = pnand %p4135_p2, %p4129_p12 }
  0x39   : > { %308 = vperm.xlu1 %3840, %v298_v15   ;;  %318 = vperm.xlu0 %3839, %v300_v16   ;;  %v285_v37 = vld [vmem:[%s4334_s12 + $0xc0] sm:$0xff]  ;;  %v287_v38 = vld [vmem:[%s4334_s12 + $0xd0] sm:$0xff]  ;;  %v290_v39 = vld [vmem:[%s4334_s12 + $0xe8] sm:$0xff] }
  0x3a   : > { %3690 = vmatmul.mubr.msk.f32.gmra.mxu0 %vm321_vm0, %v4377_v14  ;;  %3694 = vmatmul.mubr.msk.f32.gmra.mxu1 %vm321_vm0, %v4377_v14  ;;  %v292_v40 = vld [vmem:[%s4334_s12 + $0xf8] sm:$0xff]  ;;  %v289_v41 = vld [vmem:[%s4334_s12 + $0xe0] sm:$0xff]  ;;  %v291_v42 = vld [vmem:[%s4334_s12 + $0xf0] sm:$0xff] }
  0x3b   : > { %416 = vmatprep.mubr.f32.mxu0 %v5936_v0  ;;  %505 = vmatprep.mubr.f32.mxu1 %v5936_v0 }
  0x3d   : > { %303 = vperm.xlu1 %3840, %v297_v17   ;;  %313 = vperm.xlu0 %3839, %v299_v19  }
  0x3e   : > { %3691 = vmatmul.mubr.msk.f32.gmra.mxu0 %vm321_vm0, %v4397_v18  ;;  %3695 = vmatmul.mubr.msk.f32.gmra.mxu1 %vm321_vm0, %v4397_v18 }
  0x3f   : > { %576 = vmatprep.mubr.f32.mxu0 %v5936_v0  ;;  %665 = vmatprep.mubr.f32.mxu1 %v5936_v0 }
  0x41   : > { %2402 = vperm.xlu0 %3839, %v2399_v24  }
  0x42   : > { %3696 = vmatmul.mubr.msk.f32.vlgmr.msra.gmra.mxu0 %vm321_vm0, %v4349_v6  ;;  %3700 = vmatmul.mubr.msk.f32.vlgmr.msra.gmra.mxu1 %vm321_vm0, %v4349_v6 }
  0x43   : > { %721 = vmatpush1.msra.mxu0 %v269_v20  ;;  %810 = vmatpush1.msra.mxu1 %v271_v21 }
  0x44   : > { %582 = vmatprep.mubr.f32.mxu0 %v5936_v0  ;;  %671 = vmatprep.mubr.f32.mxu1 %v5936_v0 }
  0x45   : > { %898 = vmatprep.subr.mxu0 %v274_v22  ;;  %987 = vmatprep.subr.mxu1 %v276_v23 }
  0x46   : > { %3697 = vmatmul.mubr.msk.f32.gmra.mxu0 %vm321_vm0, %v4362_v11  ;;  %3701 = vmatmul.mubr.msk.f32.gmra.mxu1 %vm321_vm0, %v4362_v11 }
  0x47   : > { %588 = vmatprep.mubr.f32.mxu0 %v5936_v0  ;;  %677 = vmatprep.mubr.f32.mxu1 %v5936_v0 }
  0x4a   : > { %3698 = vmatmul.mubr.msk.f32.gmra.mxu0 %vm321_vm0, %v4377_v14  ;;  %3702 = vmatmul.mubr.msk.f32.gmra.mxu1 %vm321_vm0, %v4377_v14 }
  0x4b   : > { %594 = vmatprep.mubr.f32.mxu0 %v5936_v0  ;;  %683 = vmatprep.mubr.f32.mxu1 %v5936_v0 }
  0x4e   : > { %3699 = vmatmul.mubr.msk.f32.gmra.mxu0 %vm321_vm0, %v4397_v18  ;;  %3703 = vmatmul.mubr.msk.f32.gmra.mxu1 %vm321_vm0, %v4397_v18 }
  0x4f   : > { %754 = vmatprep.mubr.f32.mxu0 %v5936_v0  ;;  %843 = vmatprep.mubr.f32.mxu1 %v5936_v0 }
  0x52   : > { %3704 = vmatmul.mubr.msk.f32.vlgmr.msra.gmra.mxu0 %vm321_vm0, %v4349_v6  ;;  %3708 = vmatmul.mubr.msk.f32.vlgmr.msra.gmra.mxu1 %vm321_vm0, %v4349_v6 }
  0x53   : > { %899 = vmatpush1.msra.mxu0 %v273_v25  ;;  %988 = vmatpush1.msra.mxu1 %v275_v26 }
  0x54   : > { %760 = vmatprep.mubr.f32.mxu0 %v5936_v0  ;;  %849 = vmatprep.mubr.f32.mxu1 %v5936_v0 }
  0x55   : > { %1076 = vmatprep.subr.mxu0 %v278_v27  ;;  %1165 = vmatprep.subr.mxu1 %v280_v28 }
  0x56   : > { %3705 = vmatmul.mubr.msk.f32.gmra.mxu0 %vm321_vm0, %v4362_v11  ;;  %3709 = vmatmul.mubr.msk.f32.gmra.mxu1 %vm321_vm0, %v4362_v11 }
  0x57   : > { %766 = vmatprep.mubr.f32.mxu0 %v5936_v0  ;;  %855 = vmatprep.mubr.f32.mxu1 %v5936_v0 }
  0x5a   : > { %3706 = vmatmul.mubr.msk.f32.gmra.mxu0 %vm321_vm0, %v4377_v14  ;;  %3710 = vmatmul.mubr.msk.f32.gmra.mxu1 %vm321_vm0, %v4377_v14 }
  0x5b   : > { %772 = vmatprep.mubr.f32.mxu0 %v5936_v0  ;;  %861 = vmatprep.mubr.f32.mxu1 %v5936_v0 }
  0x5e   : > { %3707 = vmatmul.mubr.msk.f32.gmra.mxu0 %vm321_vm0, %v4397_v18  ;;  %3711 = vmatmul.mubr.msk.f32.gmra.mxu1 %vm321_vm0, %v4397_v18 }
  0x5f   : > { %932 = vmatprep.mubr.f32.mxu0 %v5936_v0  ;;  %1021 = vmatprep.mubr.f32.mxu1 %v5936_v0 }
  0x62   : > { %3712 = vmatmul.mubr.msk.f32.vlgmr.msra.gmra.mxu0 %vm321_vm0, %v4349_v6  ;;  %3716 = vmatmul.mubr.msk.f32.vlgmr.msra.gmra.mxu1 %vm321_vm0, %v4349_v6 }
  0x63   : > { %1077 = vmatpush1.msra.mxu0 %v277_v29  ;;  %1166 = vmatpush1.msra.mxu1 %v279_v30 }
  0x64   : > { %938 = vmatprep.mubr.f32.mxu0 %v5936_v0  ;;  %1027 = vmatprep.mubr.f32.mxu1 %v5936_v0 }
  0x65   : > { %1254 = vmatprep.subr.mxu0 %v282_v31  ;;  %1343 = vmatprep.subr.mxu1 %v284_v32 }
  0x66   : > { %3713 = vmatmul.mubr.msk.f32.gmra.mxu0 %vm321_vm0, %v4362_v11  ;;  %3717 = vmatmul.mubr.msk.f32.gmra.mxu1 %vm321_vm0, %v4362_v11 }
  0x67   : > { %944 = vmatprep.mubr.f32.mxu0 %v5936_v0  ;;  %1033 = vmatprep.mubr.f32.mxu1 %v5936_v0 }
  0x6a   : > { %3714 = vmatmul.mubr.msk.f32.gmra.mxu0 %vm321_vm0, %v4377_v14  ;;  %3718 = vmatmul.mubr.msk.f32.gmra.mxu1 %vm321_vm0, %v4377_v14 }
  0x6b   : > { %950 = vmatprep.mubr.f32.mxu0 %v5936_v0  ;;  %1039 = vmatprep.mubr.f32.mxu1 %v5936_v0 }
  0x6e   : > { %3715 = vmatmul.mubr.msk.f32.gmra.mxu0 %vm321_vm0, %v4397_v18  ;;  %3719 = vmatmul.mubr.msk.f32.gmra.mxu1 %vm321_vm0, %v4397_v18 }
  0x6f   : > { %1110 = vmatprep.mubr.f32.mxu0 %v5936_v0  ;;  %1199 = vmatprep.mubr.f32.mxu1 %v5936_v0 }
  0x72   : > { %3720 = vmatmul.mubr.msk.f32.vlgmr.msra.gmra.mxu0 %vm321_vm0, %v4349_v6  ;;  %3724 = vmatmul.mubr.msk.f32.vlgmr.msra.gmra.mxu1 %vm321_vm0, %v4349_v6 }
  0x73   : > { %1255 = vmatpush1.msra.mxu0 %v281_v33  ;;  %1344 = vmatpush1.msra.mxu1 %v283_v34 }
  0x74   : > { %1116 = vmatprep.mubr.f32.mxu0 %v5936_v0  ;;  %1205 = vmatprep.mubr.f32.mxu1 %v5936_v0 }
  0x75   : > { %1432 = vmatprep.subr.mxu0 %v286_v35  ;;  %1521 = vmatprep.subr.mxu1 %v288_v36 }
  0x76   : > { %3721 = vmatmul.mubr.msk.f32.gmra.mxu0 %vm321_vm0, %v4362_v11  ;;  %3725 = vmatmul.mubr.msk.f32.gmra.mxu1 %vm321_vm0, %v4362_v11 }
  0x77   : > { %1122 = vmatprep.mubr.f32.mxu0 %v5936_v0  ;;  %1211 = vmatprep.mubr.f32.mxu1 %v5936_v0 }
  0x7a   : > { %3722 = vmatmul.mubr.msk.f32.gmra.mxu0 %vm321_vm0, %v4377_v14  ;;  %3726 = vmatmul.mubr.msk.f32.gmra.mxu1 %vm321_vm0, %v4377_v14 }
  0x7b   : > { %1128 = vmatprep.mubr.f32.mxu0 %v5936_v0  ;;  %1217 = vmatprep.mubr.f32.mxu1 %v5936_v0 }
  0x7e   : > { %3723 = vmatmul.mubr.msk.f32.gmra.mxu0 %vm321_vm0, %v4397_v18  ;;  %3727 = vmatmul.mubr.msk.f32.gmra.mxu1 %vm321_vm0, %v4397_v18 }
  0x7f   : > { %1288 = vmatprep.mubr.f32.mxu0 %v5936_v0  ;;  %1377 = vmatprep.mubr.f32.mxu1 %v5936_v0 }
  0x82   : > { %3728 = vmatmul.mubr.msk.f32.vlgmr.msra.gmra.mxu0 %vm321_vm0, %v4349_v6  ;;  %3732 = vmatmul.mubr.msk.f32.vlgmr.msra.gmra.mxu1 %vm321_vm0, %v4349_v6 }
  0x83   : > { %1433 = vmatpush1.msra.mxu0 %v285_v37  ;;  %1522 = vmatpush1.msra.mxu1 %v287_v38 }
  0x84   : > { %1294 = vmatprep.mubr.f32.mxu0 %v5936_v0  ;;  %1383 = vmatprep.mubr.f32.mxu1 %v5936_v0 }
  0x85   : > { %1610 = vmatprep.subr.mxu0 %v290_v39  ;;  %1699 = vmatprep.subr.mxu1 %v292_v40 }
  0x86   : > { %3729 = vmatmul.mubr.msk.f32.gmra.mxu0 %vm321_vm0, %v4362_v11  ;;  %3733 = vmatmul.mubr.msk.f32.gmra.mxu1 %vm321_vm0, %v4362_v11 }
  0x87   : > { %1300 = vmatprep.mubr.f32.mxu0 %v5936_v0  ;;  %1389 = vmatprep.mubr.f32.mxu1 %v5936_v0 }
  0x8a   : > { %3730 = vmatmul.mubr.msk.f32.gmra.mxu0 %vm321_vm0, %v4377_v14  ;;  %3734 = vmatmul.mubr.msk.f32.gmra.mxu1 %vm321_vm0, %v4377_v14 }
  0x8b   : > { %1306 = vmatprep.mubr.f32.mxu0 %v5936_v0  ;;  %1395 = vmatprep.mubr.f32.mxu1 %v5936_v0 }
  0x8e   : > { %3731 = vmatmul.mubr.msk.f32.gmra.mxu0 %vm321_vm0, %v4397_v18  ;;  %3735 = vmatmul.mubr.msk.f32.gmra.mxu1 %vm321_vm0, %v4397_v18 }
  0x8f   : > { %1466 = vmatprep.mubr.f32.mxu0 %v5936_v0  ;;  %1555 = vmatprep.mubr.f32.mxu1 %v5936_v0 }
  0x92   : > { %3736 = vmatmul.mubr.msk.f32.vlgmr.msra.gmra.mxu0 %vm321_vm0, %v4349_v6  ;;  %3740 = vmatmul.mubr.msk.f32.vlgmr.msra.gmra.mxu1 %vm321_vm0, %v4349_v6 }
  0x93   : > { %1611 = vmatpush1.msra.mxu0 %v289_v41  ;;  %1700 = vmatpush1.msra.mxu1 %v291_v42 }
  0x94   : > { %1472 = vmatprep.mubr.f32.mxu0 %v5936_v0  ;;  %1561 = vmatprep.mubr.f32.mxu1 %v5936_v0 }
  0x96   : > { %3737 = vmatmul.mubr.msk.f32.gmra.mxu0 %vm321_vm0, %v4362_v11  ;;  %3741 = vmatmul.mubr.msk.f32.gmra.mxu1 %vm321_vm0, %v4362_v11 }
  0x97   : > { %1478 = vmatprep.mubr.f32.mxu0 %v5936_v0  ;;  %1567 = vmatprep.mubr.f32.mxu1 %v5936_v0 }
  0x9a   : > { %3738 = vmatmul.mubr.msk.f32.gmra.mxu0 %vm321_vm0, %v4377_v14  ;;  %3742 = vmatmul.mubr.msk.f32.gmra.mxu1 %vm321_vm0, %v4377_v14 }
  0x9b   : > { %1484 = vmatprep.mubr.f32.mxu0 %v5936_v0  ;;  %1573 = vmatprep.mubr.f32.mxu1 %v5936_v0 }
  0x9e   : > { %3739 = vmatmul.mubr.msk.f32.gmra.mxu0 %vm321_vm0, %v4397_v18  ;;  %3743 = vmatmul.mubr.msk.f32.gmra.mxu1 %vm321_vm0, %v4397_v18 }
  0x9f   : > { %1644 = vmatprep.mubr.f32.mxu0 %v5936_v0  ;;  %1733 = vmatprep.mubr.f32.mxu1 %v5936_v0 }
  0xa2   : > { %3744 = vmatmul.mubr.msk.f32.vlgmr.msra.gmra.mxu0 %vm321_vm0, %v4349_v6  ;;  %3748 = vmatmul.mubr.msk.f32.vlgmr.msra.gmra.mxu1 %vm321_vm0, %v4349_v6 }
  0xa3   : > { %1650 = vmatprep.mubr.f32.mxu0 %v5936_v0  ;;  %1739 = vmatprep.mubr.f32.mxu1 %v5936_v0 }
  0xa6   : > { %3745 = vmatmul.mubr.msk.f32.gmra.mxu0 %vm321_vm0, %v4362_v11  ;;  %3749 = vmatmul.mubr.msk.f32.gmra.mxu1 %vm321_vm0, %v4362_v11 }
  0xa7   : > { %1656 = vmatprep.mubr.f32.mxu0 %v5936_v0  ;;  %1745 = vmatprep.mubr.f32.mxu1 %v5936_v0 }
  0xaa   : > { %3746 = vmatmul.mubr.msk.f32.gmra.mxu0 %vm321_vm0, %v4377_v14  ;;  %3750 = vmatmul.mubr.msk.f32.gmra.mxu1 %vm321_vm0, %v4377_v14 }
  0xab   : > { %1662 = vmatprep.mubr.f32.mxu0 %v5936_v0  ;;  %1751 = vmatprep.mubr.f32.mxu1 %v5936_v0 }
  0xae   : > { %3747 = vmatmul.mubr.msk.f32.gmra.mxu0 %vm321_vm0, %v4397_v18  ;;  %3751 = vmatmul.mubr.msk.f32.gmra.mxu1 %vm321_vm0, %v4397_v18 }
  0xaf   : > { %2473 = vmatprep.mubr.f32.mxu0 %v5936_v0  ;;  %2544 = vmatprep.mubr.f32.mxu1 %v5936_v0 }
  0xb4   : > { %v4601_v43 = vpop.permute.xlu1 %308  ;;  %v4606_v52 = vpop.permute.xlu0 %318 }
  0xb8   : > { %v4603_v46 = vpop.permute.xlu1 %303  ;;  %v4611_v1 = vpop.permute.xlu0 %313 }
  0xf2   : > { %v400_v44 = vpop.f32.mrf.mxu0  ;;  %v489_v45 = vpop.f32.mrf.mxu1 }
  0xf3   : > { %v401_v49 = vadd.f32 %v400_v44, %v4603_v46  ;;  %v490_v53 = vadd.f32 %v489_v45, %v4603_v46 }
  0xf4   : > { %v402_v47 = vpop.f32.mrf.mxu0  ;;  %v491_v48 = vpop.f32.mrf.mxu1 }
  0xf5   : > { %v1886_v56 = vmul.f32 0.70710677, %v401_v49  ;;  %v1888_v60 = vmul.f32 0.70710677, %v490_v53  ;;  %v403_v2 = vadd.f32 %v402_v47, %v4603_v46  ;;  %v492_v5 = vadd.f32 %v491_v48, %v4603_v46 }
  0xf6   : > { %v406_v50 = vpop.f32.mrf.mxu0  ;;  %v495_v51 = vpop.f32.mrf.mxu1  ;;  %v4621_v24 = vmul.f32 0.5, %v401_v49  ;;  %v4624_v29 = vmul.f32 0.5, %v490_v53 }
  0xf7   : > { %v407_v59 = vadd.f32 %v406_v50, %v4601_v43  ;;  %v496_v63 = vadd.f32 %v495_v51, %v4601_v43  ;;  %3841 = verf.f32 %v1886_v56  ;;  %v1887_v12 = vmul.f32 0.70710677, %v403_v2 }
  0xf8   : > { %v408_v54 = vpop.f32.mrf.mxu0  ;;  %v497_v55 = vpop.f32.mrf.mxu1  ;;  %3843 = verf.f32 %v1888_v60  ;;  %v1889_v16 = vmul.f32 0.70710677, %v492_v5  ;;  %v4627_v32 = vmul.f32 0.5, %v403_v2  ;;  %v4634_v37 = vmul.f32 0.5, %v492_v5 }
  0xf9   : > { %v1918_v6 = vmul.f32 0.70710677, %v407_v59  ;;  %v1920_v10 = vmul.f32 0.70710677, %v496_v63  ;;  %v409_v13 = vadd.f32 %v408_v54, %v4601_v43  ;;  %v498_v18 = vadd.f32 %v497_v55, %v4601_v43 }
  0xfa   : > { %v412_v57 = vpop.f32.mrf.mxu0  ;;  %v501_v58 = vpop.f32.mrf.mxu1  ;;  %v4637_v40 = vmul.f32 0.5, %v407_v59  ;;  %v4639_v41 = vmul.f32 0.5, %v496_v63 }
  0xfb   : > { %v413_v7 = vadd.f32 %v412_v57, %v4611_v1  ;;  %v502_v11 = vadd.f32 %v501_v58, %v4611_v1  ;;  %3845 = verf.f32 %v1918_v6  ;;  %v1919_v25 = vmul.f32 0.70710677, %v409_v13 }
  0xfc   : > { %v414_v61 = vpop.f32.mrf.mxu0  ;;  %v503_v62 = vpop.f32.mrf.mxu1  ;;  %3847 = verf.f32 %v1920_v10  ;;  %v1921_v33 = vmul.f32 0.70710677, %v498_v18  ;;  %v4645_v48 = vmul.f32 0.5, %v409_v13  ;;  %v4648_v51 = vmul.f32 0.5, %v498_v18 }
  0xfd   : > { %v1950_v19 = vmul.f32 0.70710677, %v413_v7  ;;  %v1952_v22 = vmul.f32 0.70710677, %v502_v11  ;;  %v415_v23 = vadd.f32 %v414_v61, %v4611_v1  ;;  %3849 = verf.f32 %v1887_v12 }
  0xfe   : > { %v418_v3 = vpop.f32.mrf.mxu0  ;;  %v507_v4 = vpop.f32.mrf.mxu1  ;;  %3851 = verf.f32 %v1889_v16  ;;  %v504_v39 = vadd.f32 %v503_v62, %v4611_v1  ;;  %v4655_v58 = vmul.f32 0.5, %v413_v7  ;;  %v4657_v59 = vmul.f32 0.5, %v502_v11 }
  0xff   : > { %v419_v17 = vadd.f32 %v418_v3, %v4606_v52  ;;  %v508_v26 = vadd.f32 %v507_v4, %v4606_v52  ;;  %3853 = verf.f32 %v1950_v19  ;;  %v1951_v38 = vmul.f32 0.70710677, %v415_v23 }
 0x100   : > { %v420_v8 = vpop.f32.mrf.mxu0  ;;  %v509_v9 = vpop.f32.mrf.mxu1  ;;  %3855 = verf.f32 %v1952_v22  ;;  %v1953_v60 = vmul.f32 0.70710677, %v504_v39  ;;  %v4659_v62 = vmul.f32 0.5, %v415_v23  ;;  %v4661_v63 = vmul.f32 0.5, %v504_v39 }
 0x101   : > { %v1982_v30 = vmul.f32 0.70710677, %v419_v17  ;;  %v421_v31 = vadd.f32 %v420_v8, %v4606_v52  ;;  %v510_v34 = vadd.f32 %v509_v9, %v4606_v52  ;;  %3857 = verf.f32 %v1919_v25 }
 0x102   : > { %v578_v14 = vpop.f32.mrf.mxu0  ;;  %v667_v15 = vpop.f32.mrf.mxu1  ;;  %v1984_v42 = vmul.f32 0.70710677, %v508_v26  ;;  %v4667_v4 = vmul.f32 0.5, %v419_v17  ;;  %v4675_v13 = vmul.f32 0.5, %v508_v26 }
 0x103   : > { %3859 = verf.f32 %v1982_v30  ;;  %v1983_v49 = vmul.f32 0.70710677, %v421_v31  ;;  %v579_v50 = vadd.f32 %v578_v14, %v4603_v46  ;;  %v1985_v53 = vmul.f32 0.70710677, %v510_v34 }
 0x104   : > { %v580_v20 = vpop.f32.mrf.mxu0  ;;  %v669_v21 = vpop.f32.mrf.mxu1  ;;  %3861 = verf.f32 %v1921_v33  ;;  %v668_v54 = vadd.f32 %v667_v15, %v4603_v46  ;;  %v4677_v14 = vmul.f32 0.5, %v421_v31  ;;  %v4683_v18 = vmul.f32 0.5, %v510_v34 }
 0x105   : > { %v3842_v47 = vpop.eup %3841  ;;  %3863 = verf.f32 %v1951_v38  ;;  %v1890_v5 = vmul.f32 0.70710677, %v579_v50  ;;  %v581_v6 = vadd.f32 %v580_v20, %v4603_v46  ;;  %v670_v10 = vadd.f32 %v669_v21, %v4603_v46 }
 0x106   : > { %v584_v27 = vpop.f32.mrf.mxu0  ;;  %v673_v28 = vpop.f32.mrf.mxu1  ;;  %v2142_v61 = vadd.f32 1.0, %v3842_v47  ;;  %3865 = verf.f32 %v1984_v42  ;;  %v1892_v9 = vmul.f32 0.70710677, %v668_v54  ;;  %v4685_v19 = vmul.f32 0.5, %v579_v50 }
 0x107   : > { %v3844_v57 = vpop.eup %3843  ;;  %3867 = verf.f32 %v1983_v49  ;;  %v585_v15 = vadd.f32 %v584_v27, %v4601_v43  ;;  %v674_v20 = vadd.f32 %v673_v28, %v4601_v43  ;;  %v4694_v26 = vmul.f32 0.5, %v668_v54 }
 0x108   : > { %v4630_v35 = vpop.f32.mrf.mxu0  ;;  %v4632_v36 = vpop.f32.mrf.mxu1  ;;  %v2144_v8 = vadd.f32 1.0, %v3844_v57  ;;  %3869 = verf.f32 %v1985_v53  ;;  %v4681_v17 = vmul.f32 %v2142_v61, %v4621_v24  ;;  %v1891_v27 = vmul.f32 0.70710677, %v581_v6 }
 0x109   : > { %v3846_v7 = vpop.eup %3845  ;;  %3871 = verf.f32 %v1953_v60  ;;  %v1893_v31 = vmul.f32 0.70710677, %v670_v10  ;;  %v587_v28 = vadd.f32 %v4630_v35, %v4601_v43  ;;  %v4707_v42 = vmul.f32 0.5, %v581_v6 }
 0x10a   : > { %v4641_v44 = vpop.f32.mrf.mxu0  ;;  %v4643_v45 = vpop.f32.mrf.mxu1  ;;  %5947 = vst [vmem:[#allocation8_spill] sm:$0xff] %v4681_v17  ;;  %v2174_v25 = vadd.f32 1.0, %v3846_v7  ;;  %3873 = verf.f32 %v1890_v5  ;;  %v4699_v24 = vmul.f32 %v2144_v8, %v4624_v29  ;;  %v1922_v47 = vmul.f32 0.70710677, %v585_v15 }
 0x10b   : > { %v3848_v16 = vpop.eup %3847  ;;  %3875 = verf.f32 %v1892_v9  ;;  %5949 = vst [vmem:[#allocation10_spill] sm:$0xff] %v4707_v42  ;;  %v676_v49 = vadd.f32 %v4632_v36, %v4601_v43  ;;  %v4711_v29 = vmul.f32 0.5, %v670_v10  ;;  %v4713_v53 = vmul.f32 0.5, %v585_v15 }
 0x10c   : > { %v4651_v55 = vpop.f32.mrf.mxu0  ;;  %v4653_v56 = vpop.f32.mrf.mxu1  ;;  %5948 = vst [vmem:[#allocation9_spill] sm:$0xff] %v4699_v24  ;;  %v2176_v39 = vadd.f32 1.0, %v3848_v16  ;;  %v1924_v54 = vmul.f32 0.70710677, %v674_v20  ;;  %v591_v35 = vadd.f32 %v4641_v44, %v4611_v1  ;;  %v4724_v5 = vmul.f32 %v2174_v25, %v4637_v40 }
 0x10d   : > { %v4692_v23 = vpop.eup %3849  ;;  %5950 = vst [vmem:[#allocation11_spill] sm:$0xff] %v4711_v29  ;;  %3877 = verf.f32 %v1891_v27  ;;  %v4726_v36 = vmul.f32 0.5, %v674_v20  ;;  %v680_v6 = vadd.f32 %v4643_v45, %v4611_v1  ;;  %v1923_v9 = vmul.f32 0.70710677, %v587_v28 }
 0x10e   : > { %v4663_v2 = vpop.f32.mrf.mxu0  ;;  %v4665_v3 = vpop.f32.mrf.mxu1  ;;  %3879 = verf.f32 %v1893_v31  ;;  %v593_v44 = vadd.f32 %v4651_v55, %v4611_v1  ;;  %v1925_v20 = vmul.f32 0.70710677, %v676_v49  ;;  %v4743_v27 = vmul.f32 %v2176_v39, %v4639_v41 }
 0x10f   : > { %v4696_v30 = vpop.eup %3851  ;;  %5951 = vst [vmem:[#allocation12_spill] sm:$0xff] %v4726_v36  ;;  %3881 = verf.f32 %v1922_v47  ;;  %v4740_v25 = vadd.f32 %v4663_v2, %v4606_v52  ;;  %v1954_v31 = vmul.f32 0.70710677, %v591_v35  ;;  %v4747_v55 = vadd.f32 %v4665_v3, %v4606_v52 }
 0x110   : > { %v4671_v11 = vpop.f32.mrf.mxu0  ;;  %v4673_v12 = vpop.f32.mrf.mxu1  ;;  %3883 = verf.f32 %v1924_v54  ;;  %v4753_v29 = vmul.f32 0.5, %v587_v28  ;;  %v1956_v2 = vmul.f32 0.70710677, %v680_v6  ;;  %v682_v42 = vadd.f32 %v4653_v56, %v4611_v1 }
 0x111   : > { %v3854_v38 = vpop.eup %3853  ;;  %3885 = verf.f32 %v1923_v9  ;;  %v4760_v54 = vmul.f32 0.5, %v676_v49  ;;  %v1955_v3 = vmul.f32 0.70710677, %v593_v44  ;;  %v1986_v56 = vmul.f32 0.70710677, %v4740_v25 }
 0x112   : > { %v4688_v21 = vpop.f32.mrf.mxu0  ;;  %v4690_v22 = vpop.f32.mrf.mxu1  ;;  %v2206_v8 = vadd.f32 1.0, %v3854_v38  ;;  %5952 = vst [vmem:[#allocation13_spill] sm:$0xff] %v4753_v29  ;;  %v1988_v49 = vmul.f32 0.70710677, %v4747_v55 }
 0x113   : > { %v3856_v50 = vpop.eup %3855  ;;  %5953 = vst [vmem:[#allocation14_spill] sm:$0xff] %v4760_v54  ;;  %3887 = verf.f32 %v1925_v20 }
 0x114   : > { %v4703_v33 = vpop.f32.mrf.mxu0  ;;  %v4705_v34 = vpop.f32.mrf.mxu1  ;;  %v2208_v40 = vadd.f32 1.0, %v3856_v50  ;;  %v4758_v39 = vmul.f32 %v2206_v8, %v4655_v58  ;;  %v4772_v8 = vmul.f32 0.5, %v680_v6  ;;  %v599_v6 = vadd.f32 %v4671_v11, %v4606_v52 }
 0x115   : > { %v4721_v61 = vpop.eup %3857  ;;  %3889 = verf.f32 %v1954_v31  ;;  %v688_v11 = vadd.f32 %v4673_v12, %v4606_v52 }
 0x116   : > { %v4717_v57 = vpop.f32.mrf.mxu0  ;;  %v4719_v60 = vpop.f32.mrf.mxu1  ;;  %v4767_v28 = vmul.f32 %v2208_v40, %v4657_v59  ;;  %5955 = vst [vmem:[#allocation16_spill] sm:$0xff] %v4772_v8  ;;  %v1957_v59 = vmul.f32 0.70710677, %v682_v42  ;;  %v4790_v8 = vmul.f32 0.5, %v593_v44 }
 0x117   : > { %v3860_v7 = vpop.eup %3859  ;;  %3891 = verf.f32 %v1956_v2 }
 0x118   : > { %v4732_v10 = vpop.f32.mrf.mxu0  ;;  %v4734_v15 = vpop.f32.mrf.mxu1  ;;  %v2238_v50 = vadd.f32 1.0, %v3860_v7  ;;  %v4769_v7 = vmul.f32 0.5, %v591_v35  ;;  %v4782_v35 = vadd.f32 %v4688_v21, %v4603_v46  ;;  %v4796_v21 = vadd.f32 %v4690_v22, %v4603_v46 }
 0x119   : > { %v4736_v16 = vpop.eup %3861  ;;  %3893 = verf.f32 %v1955_v3 }
 0x11a   : > { %v3864_v45 = vpop.eup %3863  ;;  %v4749_v38 = vpop.f32.mrf.mxu0  ;;  %3895 = verf.f32 %v1986_v56  ;;  %v1894_v3 = vmul.f32 0.70710677, %v4782_v35 }
 0x11b   : > { %v4751_v0 = vpop.f32.mrf.mxu1  ;;  %v3866_v47 = vpop.eup %3865  ;;  %3897 = verf.f32 %v1988_v49  ;;  %v1987_v49 = vmul.f32 0.70710677, %v599_v6  ;;  %v2207_v12 = vadd.f32 1.0, %v3864_v45  ;;  %v4827_v45 = vmul.f32 0.5, %v599_v6 }
 0x11c   : > { %v3868_v41 = vpop.eup %3867  ;;  %v4762_v24 = vpop.f32.mrf.mxu0  ;;  %v2240_v58 = vadd.f32 1.0, %v3866_v47  ;;  %3899 = verf.f32 %v1957_v59  ;;  %v1896_v59 = vmul.f32 0.70710677, %v4796_v21 }
 0x11d   : > { %v4764_v17 = vpop.f32.mrf.mxu1  ;;  %v3870_v36 = vpop.eup %3869  ;;  %v2239_v20 = vadd.f32 1.0, %v3868_v41  ;;  %3901 = verf.f32 %v1894_v3  ;;  %v4865_v3 = vmul.f32 0.5, %v4782_v35  ;;  %v765_v35 = vadd.f32 %v4732_v10, %v4601_v43 }
 0x11e   : > { %5954 = vst [vmem:[#allocation15_spill] sm:$0xff] %v4764_v17  ;;  %v3872_v29 = vpop.eup %3871  ;;  %v4775_v9 = vpop.f32.mrf.mxu0  ;;  %v2366_v17 = vmul.f32 %v2238_v50, %v4667_v4  ;;  %v2241_v31 = vadd.f32 1.0, %v3870_v36  ;;  %v4792_v4 = vmul.f32 0.5, %v682_v42  ;;  %v2368_v42 = vmul.f32 %v2240_v58, %v4675_v13 }
 0x11f   : > { %5956 = vst [vmem:[#allocation17_spill] sm:$0xff] %v4775_v9  ;;  %v4777_v54 = vpop.f32.mrf.mxu1  ;;  %v3874_v40 = vpop.eup %3873  ;;  %v2367_v36 = vmul.f32 %v2239_v20, %v4677_v14  ;;  %v2209_v14 = vadd.f32 1.0, %v3872_v29  ;;  %v4817_v13 = vmul.f32 0.5, %v4740_v25  ;;  %v4820_v58 = vmul.f32 0.5, %v4747_v55 }
 0x120   : > { %5957 = vst [vmem:[#allocation18_spill] sm:$0xff] %v4777_v54  ;;  %v4786_v47 = vpop.f32.mrf.mxu0  ;;  %v3876_v54 = vpop.eup %3875  ;;  %v2369_v50 = vmul.f32 %v2241_v31, %v4683_v18  ;;  %v2146_v44 = vadd.f32 1.0, %v3874_v40  ;;  %v1989_v40 = vmul.f32 0.70710677, %v688_v11  ;;  %3903 = verf.f32 %v1987_v49 }
 0x121   : > { %v4788_v9 = vpop.f32.mrf.mxu1  ;;  %v4808_v22 = vpop.eup %3877  ;;  %v2148_v56 = vadd.f32 1.0, %v3876_v54  ;;  %2433 = vmatprep.subr.mxu0 %v2367_v36  ;;  %v4825_v54 = vadd.f32 %v4717_v57, %v4601_v43  ;;  %v2335_v36 = vmul.f32 %v2207_v12, %v4659_v62  ;;  %v2337_v25 = vmul.f32 %v2209_v14, %v4661_v63 }
 0x122   : > { %v4802_v2 = vpop.f32.mrf.mxu0  ;;  %5958 = vst [vmem:[#allocation19_spill] sm:$0xff] %v4808_v22  ;;  %2504 = vmatprep.subr.mxu1 %v2369_v50  ;;  %v4814_v31 = vpop.eup %3879  ;;  %2434 = vmatpush1.msra.mxu0 %v2366_v17  ;;  %v4836_v22 = vmul.f32 %v2146_v44, %v4685_v19  ;;  %v4838_v57 = vmul.f32 0.5, %v688_v11  ;;  %v4842_v17 = vadd.f32 %v4719_v60, %v4601_v43  ;;  %v2175_v19 = vadd.f32 1.0, %v4721_v61 }
 0x123   : > { %v4804_v41 = vpop.f32.mrf.mxu1  ;;  %5959 = vst [vmem:[#allocation20_spill] sm:$0xff] %v4814_v31  ;;  %2505 = vmatpush1.msra.mxu1 %v2368_v42  ;;  %v3882_v29 = vpop.eup %3881  ;;  %v4845_v62 = vmul.f32 %v2148_v56, %v4694_v26  ;;  %v759_v63 = vadd.f32 %v4703_v33, %v4603_v46  ;;  %2435 = vmatprep.subr.mxu0 %v2335_v36  ;;  %3905 = verf.f32 %v1896_v59  ;;  %v1926_v26 = vmul.f32 0.70710677, %v4825_v54 }
 0x124   : > { %v4810_v20 = vpop.f32.mrf.mxu0  ;;  %v3884_v31 = vpop.eup %3883  ;;  %2506 = vmatprep.subr.mxu1 %v2337_v25  ;;  %v848_v60 = vadd.f32 %v4705_v34, %v4603_v46  ;;  %2436 = vmatpush1.msra.mxu0 %v4758_v39  ;;  %v2177_v33 = vadd.f32 1.0, %v4736_v16  ;;  %v2178_v61 = vadd.f32 1.0, %v3882_v29  ;;  %3907 = verf.f32 %v1989_v40 }
 0x125   : > { %v4812_v18 = vpop.f32.mrf.mxu1  ;;  %v4854_v42 = vpop.eup %3885  ;;  %2507 = vmatpush1.msra.mxu1 %v4767_v28  ;;  %v2303_v56 = vmul.f32 %v2175_v19, %v4645_v48  ;;  %v2180_v14 = vadd.f32 1.0, %v3884_v31  ;;  %v4873_v39 = vmul.f32 0.5, %v4796_v21  ;;  %v1928_v16 = vmul.f32 0.70710677, %v4842_v17 }
 0x126   : > { %v4831_v50 = vpop.f32.mrf.mxu0  ;;  %v4862_v44 = vpop.eup %3887  ;;  %v2305_v28 = vmul.f32 %v2177_v33, %v4648_v51  ;;  %v1895_v29 = vmul.f32 0.70710677, %v759_v63  ;;  %v2143_v48 = vadd.f32 1.0, %v4692_v23  ;;  %v2145_v40 = vadd.f32 1.0, %v4696_v30 }
 0x127   : > { %v4833_v55 = vpop.f32.mrf.mxu1  ;;  %v3890_v12 = vpop.eup %3889  ;;  %2437 = vmatprep.subr.mxu0 %v2303_v56  ;;  %v4887_v25 = vmul.f32 0.5, %v759_v63  ;;  %v1897_v19 = vmul.f32 0.70710677, %v848_v60  ;;  %3909 = verf.f32 %v1926_v26  ;;  %v769_v51 = vadd.f32 %v4749_v38, %v4611_v1 }
 0x128   : > { %v4850_v6 = vpop.f32.mrf.mxu0  ;;  %v3892_v59 = vpop.eup %3891  ;;  %2508 = vmatprep.subr.mxu1 %v2305_v28  ;;  %2438 = vmatpush1.msra.mxu0 %v4724_v5  ;;  %v4893_v23 = vmul.f32 %v2178_v61, %v4713_v53  ;;  %v854_v30 = vadd.f32 %v4734_v15, %v4601_v43  ;;  %v2271_v63 = vmul.f32 %v2143_v48, %v4627_v32  ;;  %v2210_v28 = vadd.f32 1.0, %v3890_v12  ;;  %v4909_v15 = vld [vmem:[%s5933_s3] sm:$0xff] }
 0x129   : > { %v4852_v11 = vpop.f32.mrf.mxu1  ;;  %v4885_v21 = vpop.eup %3893  ;;  %5960 = vst [vmem:[#allocation21_spill] sm:$0xff] %v4887_v25  ;;  %2509 = vmatpush1.msra.mxu1 %v4743_v27  ;;  %v2273_v33 = vmul.f32 %v2145_v40, %v4634_v37  ;;  %v2212_v5 = vadd.f32 1.0, %v3892_v59  ;;  %3911 = verf.f32 %v1928_v16  ;;  %v858_v53 = vadd.f32 %v4751_v0, %v4611_v1  ;;  %v5962_v32 = vld [vmem:[#allocation12_spill] sm:$0xff] }
 0x12a   : > { %v4868_v49 = vpop.f32.mrf.mxu0  ;;  %v3896_v10 = vpop.eup %3895  ;;  %v4914_v37 = vmul.f32 %v2180_v14, %v5962_v32  ;;  %3913 = verf.f32 %v1895_v29  ;;  %v4916_v61 = vmul.f32 0.5, %v848_v60  ;;  %v1927_v48 = vmul.f32 0.70710677, %v765_v35  ;;  %2439 = vmatprep.subr.mxu0 %v2271_v63  ;;  %v5966_v14 = vld [vmem:[#allocation8_spill] sm:$0xff]  ;;  %v5967_v29 = vld [vmem:[#allocation9_spill] sm:$0xff] }
 0x12b   : > { %v4870_v34 = vpop.f32.mrf.mxu1  ;;  %v3898_v38 = vpop.eup %3897  ;;  %2510 = vmatprep.subr.mxu1 %v2273_v33  ;;  %3915 = verf.f32 %v1897_v19  ;;  %v4923_v0 = vmul.f32 0.5, %v4825_v54  ;;  %v1958_v59 = vmul.f32 0.70710677, %v769_v51  ;;  %v771_v40 = vadd.f32 %v4762_v24, %v4611_v1  ;;  %2440 = vmatpush1.msra.mxu0 %v5966_v14  ;;  %v5970_v14 = vld [vmem:[#allocation16_spill] sm:$0xff] }
 0x12c   : > { %v4881_v36 = vpop.f32.mrf.mxu0  ;;  %v4911_v27 = vpop.eup %3899  ;;  %5963 = vst [vmem:[#allocation12_spill] sm:$0xff] %v4916_v61  ;;  %2511 = vmatpush1.msra.mxu1 %v5967_v29  ;;  %v2242_v60 = vadd.f32 1.0, %v3896_v10  ;;  %v2244_v32 = vadd.f32 1.0, %v3898_v38  ;;  %v4930_v63 = vmul.f32 0.5, %v4842_v17  ;;  %v1929_v33 = vmul.f32 0.70710677, %v854_v30  ;;  %3752 = vmatmul.mubr.msk.f32.vlgmr.msra.gmra.mxu0 %vm2405_vm1, %v4909_v15 }
 0x12d   : > { %v4883_v31 = vpop.f32.mrf.mxu1  ;;  %3753 = vmatmul.mubr.msk.f32.vlgmr.msra.gmra.mxu1 %vm2405_vm1, %v4909_v15  ;;  %v4941_v24 = vmul.f32 %v2210_v28, %v4769_v7  ;;  %v4944_v10 = vmul.f32 %v2212_v5, %v5970_v14  ;;  %v1960_v38 = vmul.f32 0.70710677, %v858_v53  ;;  %v5971_v17 = vld [vmem:[#allocation15_spill] sm:$0xff]  ;;  %v5972_v61 = vmov 0.0   ;;  %v3902_v25 = vpop.eup %3901 }
 0x12e   : > { %v4900_v26 = vpop.f32.mrf.mxu0  ;;  %v860_v29 = vadd.f32 %v5971_v17, %v4611_v1  ;;  %2615 = vmatprep.mubr.f32.mxu0 %v5972_v61  ;;  %2686 = vmatprep.mubr.f32.mxu1 %v5972_v61  ;;  %3917 = verf.f32 %v1927_v48  ;;  %v4956_v7 = vadd.f32 %v4786_v47, %v4606_v52  ;;  %v3904_v14 = vpop.eup %3903  ;;  %v4962_v17 = vmul.f32 0.5, %v769_v51  ;;  %v5978_v47 = vld [vmem:[#allocation18_spill] sm:$0xff] }
 0x12f   : > { %v4902_v56 = vpop.f32.mrf.mxu1  ;;  %3919 = verf.f32 %v1958_v59  ;;  %v2372_v48 = vmul.f32 %v2244_v32, %v4820_v58  ;;  %v4978_v61 = vmul.f32 0.5, %v858_v53 }
 0x130   : > { %5961 = vst [vmem:[#allocation22_spill] sm:$0xff] %v4902_v56  ;;  %v4918_v12 = vpop.f32.mrf.mxu0  ;;  %3921 = verf.f32 %v1929_v33  ;;  %v2150_v56 = vadd.f32 1.0, %v3902_v25  ;;  %v1961_v59 = vmul.f32 0.70710677, %v860_v29  ;;  %v1991_v58 = vmul.f32 0.70710677, %v4956_v7 }
 0x131   : > { %5964 = vst [vmem:[#allocation23_spill] sm:$0xff] %v4918_v12  ;;  %v4920_v16 = vpop.f32.mrf.mxu1  ;;  %v5977_v12 = vld [vmem:[#allocation17_spill] sm:$0xff]  ;;  %3923 = verf.f32 %v1960_v38 }
 0x132   : > { %5965 = vst [vmem:[#allocation24_spill] sm:$0xff] %v4920_v16  ;;  %v4936_v54 = vpop.f32.mrf.mxu0  ;;  %v4950_v16 = vmul.f32 0.5, %v765_v35  ;;  %v775_v35 = vadd.f32 %v5977_v12, %v4606_v52  ;;  %v4976_v12 = vadd.f32 %v4802_v2, %v4603_v46  ;;  %v4993_v2 = vadd.f32 %v4804_v41, %v4603_v46 }
 0x133   : > { %5968 = vst [vmem:[#allocation8_spill] sm:$0xff] %v4936_v54  ;;  %v4938_v19 = vpop.f32.mrf.mxu1  ;;  %v4952_v54 = vmul.f32 0.5, %v854_v30  ;;  %v2370_v30 = vmul.f32 %v2242_v60, %v4817_v13  ;;  %v4980_v13 = vmul.f32 0.5, %v771_v40  ;;  %v4985_v60 = vadd.f32 %v4788_v9, %v4606_v52 }
 0x134   : > { %5969 = vst [vmem:[#allocation9_spill] sm:$0xff] %v4938_v19  ;;  %5973 = vst [vmem:[#allocation16_spill] sm:$0xff] %v4950_v16  ;;  %v4958_v28 = vpop.f32.mrf.mxu0  ;;  %v1959_v19 = vmul.f32 0.70710677, %v771_v40  ;;  %v3906_v16 = vpop.eup %3905  ;;  %v1990_v38 = vmul.f32 0.70710677, %v775_v35 }
 0x135   : > { %5974 = vst [vmem:[#allocation15_spill] sm:$0xff] %v4952_v54  ;;  %5975 = vst [vmem:[#allocation25_spill] sm:$0xff] %v4958_v28  ;;  %v4960_v5 = vpop.f32.mrf.mxu1  ;;  %v864_v54 = vadd.f32 %v5978_v47, %v4606_v52  ;;  %v3908_v51 = vpop.eup %3907  ;;  %v2152_v25 = vadd.f32 1.0, %v3906_v16  ;;  %v4995_v40 = vmul.f32 0.5, %v860_v29  ;;  %v1898_v16 = vmul.f32 0.70710677, %v4976_v12 }
 0x136   : > { %5976 = vst [vmem:[#allocation26_spill] sm:$0xff] %v4960_v5  ;;  %v4970_v28 = vpop.f32.mrf.mxu0  ;;  %5981 = vst [vmem:[#allocation27_spill] sm:$0xff] %v4980_v13  ;;  %3925 = verf.f32 %v1959_v19  ;;  %v3910_v53 = vpop.eup %3909  ;;  %v2211_v19 = vadd.f32 1.0, %v4885_v21  ;;  %v1993_v29 = vmul.f32 0.70710677, %v4985_v60 }
 0x137   : > { %5979 = vst [vmem:[#allocation17_spill] sm:$0xff] %v4970_v28  ;;  %v4972_v5 = vpop.f32.mrf.mxu1  ;;  %v1992_v47 = vmul.f32 0.70710677, %v864_v54  ;;  %v2245_v28 = vadd.f32 1.0, %v3908_v51  ;;  %3927 = verf.f32 %v1961_v59  ;;  %v3912_v41 = vpop.eup %3911  ;;  %v1900_v59 = vmul.f32 0.70710677, %v4993_v2 }
 0x138   : > { %5980 = vst [vmem:[#allocation18_spill] sm:$0xff] %v4972_v5  ;;  %v4987_v32 = vpop.f32.mrf.mxu0  ;;  %v2243_v5 = vadd.f32 1.0, %v3904_v14  ;;  %3929 = verf.f32 %v1991_v58  ;;  %v5021_v58 = vadd.f32 %v4831_v50, %v4601_v43  ;;  %v5031_v50 = vmul.f32 0.5, %v775_v35 }
 0x139   : > { %5982 = vst [vmem:[#allocation28_spill] sm:$0xff] %v4987_v32  ;;  %v4989_v33 = vpop.f32.mrf.mxu1  ;;  %v5002_v32 = vmul.f32 %v2150_v56, %v4865_v3  ;;  %v2373_v14 = vmul.f32 %v2245_v28, %v4838_v57  ;;  %v5014_v3 = vmul.f32 %v2152_v25, %v4873_v39  ;;  %v2182_v56 = vadd.f32 1.0, %v3910_v53 }
 0x13a   : > { %5983 = vst [vmem:[#allocation29_spill] sm:$0xff] %v4989_v33  ;;  %v4997_v13 = vpop.f32.mrf.mxu0  ;;  %v2371_v33 = vmul.f32 %v2243_v5, %v4827_v45  ;;  %3931 = verf.f32 %v1990_v38  ;;  %v2339_v45 = vmul.f32 %v2211_v19, %v4790_v8  ;;  %v2213_v57 = vadd.f32 1.0, %v4911_v27 }
 0x13b   : > { %5984 = vst [vmem:[#allocation30_spill] sm:$0xff] %v4997_v13  ;;  %v4999_v9 = vpop.f32.mrf.mxu1  ;;  %v5011_v13 = vpop.eup %3913  ;;  %3933 = verf.f32 %v1992_v47  ;;  %2646 = vmatprep.subr.mxu1 %v2373_v14  ;;  %v2184_v39 = vadd.f32 1.0, %v3912_v41  ;;  %v2179_v5 = vadd.f32 1.0, %v4854_v42  ;;  %v2181_v25 = vadd.f32 1.0, %v4862_v44 }
 0x13c   : > { %v5009_v51 = vpop.f32.mrf.mxu0  ;;  %v5017_v21 = vpop.eup %3915  ;;  %2575 = vmatprep.subr.mxu0 %v2371_v33  ;;  %3935 = verf.f32 %v1898_v16  ;;  %2647 = vmatpush1.msra.mxu1 %v2372_v48  ;;  %v1030_v8 = vadd.f32 %v4833_v55, %v4601_v43  ;;  %v2341_v27 = vmul.f32 %v2213_v57, %v4792_v4  ;;  %v5038_v53 = vmul.f32 0.5, %v864_v54  ;;  %v5985_v4 = vld [vmem:[#allocation13_spill] sm:$0xff]  ;;  %v5986_v54 = vld [vmem:[#allocation14_spill] sm:$0xff] }
 0x13d   : > { %v5025_v28 = vpop.f32.mrf.mxu1  ;;  %2576 = vmatpush1.msra.mxu0 %v2370_v30  ;;  %3937 = verf.f32 %v1993_v29  ;;  %v5036_v33 = vpop.eup %3917  ;;  %v937_v42 = vadd.f32 %v4810_v20, %v4603_v46  ;;  %v1026_v44 = vadd.f32 %v4812_v18, %v4603_v46  ;;  %v5046_v30 = vmul.f32 0.5, %v4956_v7 }
 0x13e   : > { %v5029_v38 = vpop.f32.mrf.mxu0  ;;  %2577 = vmatprep.subr.mxu0 %v2339_v45  ;;  %3939 = verf.f32 %v1900_v59  ;;  %v3920_v35 = vpop.eup %3919  ;;  %v1930_v55 = vmul.f32 0.70710677, %v5021_v58  ;;  %2648 = vmatprep.subr.mxu1 %v2341_v27  ;;  %v2307_v48 = vmul.f32 %v2179_v5, %v5985_v4  ;;  %v2309_v47 = vmul.f32 %v2181_v25, %v5986_v54  ;;  %v5989_v5 = vld [vmem:[#allocation10_spill] sm:$0xff]  ;;  %v5990_v27 = vld [vmem:[#allocation11_spill] sm:$0xff] }
 0x13f   : > { %2578 = vmatpush1.msra.mxu0 %v4941_v24  ;;  %v5051_v16 = vpop.f32.mrf.mxu1  ;;  %v5053_v19 = vpop.eup %3921  ;;  %v5056_v20 = vmul.f32 %v2182_v56, %v4923_v0  ;;  %v5059_v18 = vmul.f32 %v2184_v39, %v4930_v63  ;;  %v5062_v24 = vmul.f32 0.5, %v4985_v60  ;;  %v5065_v7 = vmul.f32 0.5, %v4976_v12  ;;  %2649 = vmatpush1.msra.mxu1 %v4944_v10  ;;  %v5987_v0 = vld [vmem:[#allocation19_spill] sm:$0xff]  ;;  %v5988_v56 = vld [vmem:[#allocation20_spill] sm:$0xff] }
 0x140   : > { %v5068_v41 = vpop.f32.mrf.mxu0  ;;  %v3924_v29 = vpop.eup %3923  ;;  %v1932_v14 = vmul.f32 0.70710677, %v1030_v8  ;;  %v943_v59 = vadd.f32 %v4850_v6, %v4601_v43  ;;  %2579 = vmatprep.subr.mxu0 %v2307_v48  ;;  %2650 = vmatprep.subr.mxu1 %v2309_v47  ;;  %v2147_v63 = vadd.f32 1.0, %v5987_v0  ;;  %v2149_v45 = vadd.f32 1.0, %v5988_v56 }
 0x141   : > { %v2214_v60 = vadd.f32 1.0, %v3920_v35  ;;  %v1899_v57 = vmul.f32 0.70710677, %v937_v42  ;;  %v1901_v39 = vmul.f32 0.70710677, %v1026_v44  ;;  %v1032_v12 = vadd.f32 %v4852_v11, %v4601_v43  ;;  %2580 = vmatpush1.msra.mxu0 %v4893_v23  ;;  %2651 = vmatpush1.msra.mxu1 %v4914_v37  ;;  %v5084_v35 = vpop.f32.mrf.mxu1 }
 0x142   : > { %3941 = verf.f32 %v1930_v55  ;;  %v947_v6 = vadd.f32 %v4868_v49, %v4611_v1  ;;  %v2275_v25 = vmul.f32 %v2147_v63, %v5989_v5  ;;  %v2277_v4 = vmul.f32 %v2149_v45, %v5990_v27  ;;  %v5093_v37 = vpop.f32.mrf.mxu0 }
 0x143   : > { %v5078_v10 = vpop.eup %3925  ;;  %v2216_v48 = vadd.f32 1.0, %v3924_v29  ;;  %v5087_v54 = vmul.f32 0.5, %v4993_v2  ;;  %v5089_v11 = vmul.f32 0.5, %v937_v42  ;;  %v1036_v23 = vadd.f32 %v4870_v34, %v4611_v1 }
 0x144   : > { %v5095_v55 = vpop.eup %3927  ;;  %v5097_v49 = vmul.f32 0.5, %v1026_v44  ;;  %v5100_v47 = vmul.f32 0.5, %v5021_v58  ;;  %3943 = verf.f32 %v1932_v14  ;;  %v1931_v0 = vmul.f32 0.70710677, %v943_v59  ;;  %2581 = vmatprep.subr.mxu0 %v2275_v25  ;;  %2652 = vmatprep.subr.mxu1 %v2277_v4 }
 0x145   : > { %5991 = vst [vmem:[#allocation13_spill] sm:$0xff] %v5089_v11  ;;  %v3930_v2 = vpop.eup %3929  ;;  %v5103_v42 = vmul.f32 %v2214_v60, %v4962_v17  ;;  %3945 = verf.f32 %v1899_v57  ;;  %v1933_v29 = vmul.f32 0.70710677, %v1032_v12  ;;  %v949_v34 = vadd.f32 %v4881_v36, %v4611_v1  ;;  %2582 = vmatpush1.msra.mxu0 %v4836_v22  ;;  %2653 = vmatpush1.msra.mxu1 %v4845_v62  ;;  %v5117_v17 = vpop.f32.mrf.mxu1 }
 0x146   : > { %5992 = vst [vmem:[#allocation14_spill] sm:$0xff] %v5097_v49  ;;  %3947 = verf.f32 %v1901_v39  ;;  %v5109_v58 = vmul.f32 0.5, %v1030_v8  ;;  %v1962_v14 = vmul.f32 0.70710677, %v947_v6  ;;  %v1038_v63 = vadd.f32 %v4883_v31, %v4611_v1  ;;  %3754 = vmatmul.mubr.msk.f32.vlgmr.msra.gmra.mxu0 %vm2405_vm1, %v4909_v15  ;;  %3755 = vmatmul.mubr.msk.f32.vlgmr.msra.gmra.mxu1 %vm2405_vm1, %v4909_v15  ;;  %v5128_v31 = vpop.f32.mrf.mxu0  ;;  %v5997_v39 = vld [vmem:[#allocation22_spill] sm:$0xff] }
 0x147   : > { %v3932_v44 = vpop.eup %3931  ;;  %v5120_v22 = vmul.f32 %v2216_v48, %v4978_v61  ;;  %v5122_v62 = vmul.f32 0.5, %v943_v59  ;;  %v1964_v8 = vmul.f32 0.70710677, %v1036_v23  ;;  %v953_v56 = vadd.f32 %v4900_v26, %v4606_v52  ;;  %5995 = vst [vmem:[#allocation20_spill] sm:$0xff] %v5128_v31 }
 0x148   : > { %v3934_v36 = vpop.eup %3933  ;;  %v5994_v45 = vmov 0.0   ;;  %3949 = verf.f32 %v1931_v0  ;;  %v5130_v57 = vmul.f32 0.5, %v1032_v12  ;;  %v1042_v61 = vadd.f32 %v5997_v39, %v4606_v52  ;;  %v5999_v39 = vld [vmem:[#allocation23_spill] sm:$0xff] }
 0x149   : > { %5993 = vst [vmem:[#allocation19_spill] sm:$0xff] %v5122_v62  ;;  %2757 = vmatprep.mubr.f32.mxu0 %v5994_v45  ;;  %2828 = vmatprep.mubr.f32.mxu1 %v5994_v45  ;;  %v3936_v60 = vpop.eup %3935  ;;  %v2247_v5 = vadd.f32 1.0, %v3930_v2  ;;  %v2246_v25 = vadd.f32 1.0, %v3932_v44  ;;  %3951 = verf.f32 %v1933_v29  ;;  %v5134_v27 = vmul.f32 0.5, %v947_v6  ;;  %v5138_v62 = vpop.f32.mrf.mxu1  ;;  %v6001_v6 = vld [vmem:[#allocation8_spill] sm:$0xff] }
 0x14a   : > { %5996 = vst [vmem:[#allocation10_spill] sm:$0xff] %v5130_v57  ;;  %v3938_v59 = vpop.eup %3937  ;;  %v1963_v26 = vmul.f32 0.70710677, %v949_v34  ;;  %v2248_v48 = vadd.f32 1.0, %v3934_v36  ;;  %3953 = verf.f32 %v1962_v14  ;;  %v5136_v49 = vmul.f32 0.5, %v1036_v23  ;;  %5998 = vst [vmem:[#allocation11_spill] sm:$0xff] %v5138_v62  ;;  %v5142_v57 = vpop.f32.mrf.mxu0 }
 0x14b   : > { %v3940_v4 = vpop.eup %3939  ;;  %v1965_v11 = vmul.f32 0.70710677, %v1038_v63  ;;  %v2154_v12 = vadd.f32 1.0, %v3936_v60  ;;  %3955 = verf.f32 %v1964_v8  ;;  %v1994_v0 = vmul.f32 0.70710677, %v953_v56  ;;  %6000 = vst [vmem:[#allocation22_spill] sm:$0xff] %v5142_v57 }
 0x14c   : > { %v955_v2 = vadd.f32 %v5999_v39, %v4606_v52  ;;  %v1996_v29 = vmul.f32 0.70710677, %v1042_v61  ;;  %v5146_v44 = vadd.f32 %v6001_v6, %v4603_v46  ;;  %v2375_v14 = vmul.f32 %v2247_v5, %v5046_v30  ;;  %v6002_v8 = vld [vmem:[#allocation9_spill] sm:$0xff]  ;;  %v5159_v6 = vpop.f32.mrf.mxu1 }
 0x14d   : > { %v2249_v23 = vadd.f32 1.0, %v3938_v59  ;;  %v2374_v36 = vmul.f32 %v2246_v25, %v5031_v50  ;;  %v2156_v31 = vadd.f32 1.0, %v3940_v4  ;;  %3957 = verf.f32 %v1963_v26  ;;  %v6003_v50 = vld [vmem:[#allocation24_spill] sm:$0xff]  ;;  %v5164_v26 = vpop.f32.mrf.mxu0 }
 0x14e   : > { %v5152_v60 = vadd.f32 %v6002_v8, %v4603_v46  ;;  %v2376_v39 = vmul.f32 %v2248_v48, %v5038_v53  ;;  %v5155_v62 = vmul.f32 0.5, %v949_v34  ;;  %v5157_v57 = vmul.f32 0.5, %v1038_v63  ;;  %2717 = vmatprep.subr.mxu0 %v2375_v14  ;;  %6004 = vst [vmem:[#allocation23_spill] sm:$0xff] %v5164_v26  ;;  %v6010_v8 = vld [vmem:[#allocation17_spill] sm:$0xff] }
 0x14f   : > { %3959 = verf.f32 %v1965_v11  ;;  %v3942_v30 = vpop.eup %3941  ;;  %v1995_v5 = vmul.f32 0.70710677, %v955_v2  ;;  %v1044_v59 = vadd.f32 %v6003_v50, %v4606_v52  ;;  %v2377_v25 = vmul.f32 %v2249_v23, %v5062_v24  ;;  %2718 = vmatpush1.msra.mxu0 %v2374_v36 }
 0x150   : > { %3961 = verf.f32 %v1994_v0  ;;  %v5167_v53 = vmul.f32 %v2154_v12, %v5065_v7  ;;  %v1902_v11 = vmul.f32 0.70710677, %v5146_v44  ;;  %v2215_v34 = vadd.f32 1.0, %v5078_v10  ;;  %v6008_v10 = vld [vmem:[#allocation27_spill] sm:$0xff] }
 0x151   : > { %3963 = verf.f32 %v1996_v29  ;;  %v3944_v63 = vpop.eup %3943  ;;  %v5172_v4 = vmul.f32 %v2156_v31, %v5087_v54  ;;  %v5174_v48 = vmul.f32 0.5, %v953_v56  ;;  %v1904_v0 = vmul.f32 0.70710677, %v5152_v60  ;;  %2788 = vmatprep.subr.mxu1 %v2377_v25  ;;  %v6007_v29 = vld [vmem:[#allocation25_spill] sm:$0xff]  ;;  %v5185_v54 = vpop.f32.mrf.mxu1 }
 0x152   : > { %6005 = vst [vmem:[#allocation8_spill] sm:$0xff] %v5167_v53  ;;  %v2217_v24 = vadd.f32 1.0, %v5095_v55  ;;  %v5178_v14 = vpop.eup %3945  ;;  %v2186_v7 = vadd.f32 1.0, %v3942_v30  ;;  %v5180_v12 = vmul.f32 0.5, %v1042_v61  ;;  %v1115_v23 = vadd.f32 %v6007_v29, %v4603_v46  ;;  %2789 = vmatpush1.msra.mxu1 %v2376_v39  ;;  %6009 = vst [vmem:[#allocation24_spill] sm:$0xff] %v5185_v54  ;;  %v5192_v30 = vpop.f32.mrf.mxu0  ;;  %v6011_v39 = vld [vmem:[#allocation18_spill] sm:$0xff] }
 0x153   : > { %6006 = vst [vmem:[#allocation9_spill] sm:$0xff] %v5172_v4  ;;  %v2343_v36 = vmul.f32 %v2215_v34, %v6008_v10  ;;  %v5187_v56 = vpop.eup %3947  ;;  %3965 = verf.f32 %v1995_v5  ;;  %v1997_v31 = vmul.f32 0.70710677, %v1044_v59  ;;  %v1119_v55 = vadd.f32 %v6010_v8, %v4601_v43  ;;  %v6012_v5 = vld [vmem:[#allocation26_spill] sm:$0xff]  ;;  %v5214_v8 = vpop.f32.mrf.mxu1 }
 0x154   : > { %v2345_v50 = vmul.f32 %v2217_v24, %v4995_v40  ;;  %v2188_v61 = vadd.f32 1.0, %v3944_v63  ;;  %v5194_v25 = vmul.f32 0.5, %v955_v2  ;;  %3967 = verf.f32 %v1902_v11  ;;  %v5218_v4 = vpop.f32.mrf.mxu0 }
 0x155   : > { %v1208_v34 = vadd.f32 %v6011_v39, %v4601_v43  ;;  %2719 = vmatprep.subr.mxu0 %v2343_v36  ;;  %v5198_v29 = vpop.eup %3949  ;;  %3969 = verf.f32 %v1904_v0  ;;  %v1204_v10 = vadd.f32 %v6012_v5, %v4603_v46  ;;  %v2183_v40 = vadd.f32 1.0, %v5036_v33  ;;  %v6013_v33 = vld [vmem:[#allocation16_spill] sm:$0xff] }
 0x156   : > { %2790 = vmatprep.subr.mxu1 %v2345_v50  ;;  %2720 = vmatpush1.msra.mxu0 %v5103_v42  ;;  %v2185_v63 = vadd.f32 1.0, %v5053_v19  ;;  %v5205_v2 = vpop.eup %3951  ;;  %v5208_v11 = vmul.f32 %v2186_v7, %v5100_v47  ;;  %v5210_v24 = vmul.f32 0.5, %v1044_v59  ;;  %v1903_v36 = vmul.f32 0.70710677, %v1115_v23  ;;  %v6014_v19 = vld [vmem:[#allocation15_spill] sm:$0xff] }
 0x157   : > { %2791 = vmatpush1.msra.mxu1 %v5120_v22  ;;  %v2151_v0 = vadd.f32 1.0, %v5011_v13  ;;  %v3954_v50 = vpop.eup %3953  ;;  %3971 = verf.f32 %v1997_v31  ;;  %v1934_v42 = vmul.f32 0.70710677, %v1119_v55  ;;  %v2311_v39 = vmul.f32 %v2183_v40, %v6013_v33  ;;  %v6015_v13 = vld [vmem:[#allocation28_spill] sm:$0xff]  ;;  %v6016_v31 = vld [vmem:[#allocation29_spill] sm:$0xff] }
 0x158   : > { %v2313_v5 = vmul.f32 %v2185_v63, %v6014_v19  ;;  %v3956_v47 = vpop.eup %3955  ;;  %v5221_v59 = vmul.f32 %v2188_v61, %v5109_v58  ;;  %v5224_v7 = vmul.f32 0.5, %v5146_v44  ;;  %v1936_v22 = vmul.f32 0.70710677, %v1208_v34  ;;  %v6017_v40 = vld [vmem:[#allocation21_spill] sm:$0xff]  ;;  %v6018_v61 = vld [vmem:[#allocation30_spill] sm:$0xff] }
 0x159   : > { %v1121_v53 = vadd.f32 %v6015_v13, %v4601_v43  ;;  %v1905_v54 = vmul.f32 0.70710677, %v1204_v10  ;;  %v1210_v26 = vadd.f32 %v6016_v31, %v4601_v43  ;;  %2721 = vmatprep.subr.mxu0 %v2311_v39  ;;  %v2279_v63 = vmul.f32 %v2151_v0, %v6017_v40  ;;  %v5241_v39 = vpop.f32.mrf.mxu1 }
 0x15a   : > { %2792 = vmatprep.subr.mxu1 %v2313_v5  ;;  %v2153_v33 = vadd.f32 1.0, %v5017_v21  ;;  %v5232_v19 = vpop.eup %3957  ;;  %v2218_v58 = vadd.f32 1.0, %v3954_v50  ;;  %v5235_v44 = vmul.f32 0.5, %v5152_v60  ;;  %3973 = verf.f32 %v1903_v36  ;;  %2722 = vmatpush1.msra.mxu0 %v5056_v20  ;;  %v6019_v60 = vld [vmem:[#allocation12_spill] sm:$0xff]  ;;  %v5248_v36 = vpop.f32.mrf.mxu0 }
 0x15b   : > { %v1125_v13 = vadd.f32 %v6018_v61, %v4611_v1  ;;  %2793 = vmatpush1.msra.mxu1 %v5059_v18  ;;  %v2220_v0 = vadd.f32 1.0, %v3956_v47  ;;  %3975 = verf.f32 %v1934_v42  ;;  %v1214_v21 = vadd.f32 %v4999_v9, %v4611_v1  ;;  %2723 = vmatprep.subr.mxu0 %v2279_v63 }
 0x15c   : > { %v5243_v5 = vpop.eup %3959  ;;  %v2281_v50 = vmul.f32 %v2153_v33, %v6019_v60  ;;  %v5250_v40 = vmul.f32 0.5, %v1115_v23  ;;  %v5252_v20 = vmul.f32 0.5, %v1204_v10  ;;  %3977 = verf.f32 %v1936_v22  ;;  %2724 = vmatpush1.msra.mxu0 %v5002_v32 }
 0x15d   : > { %v3962_v31 = vpop.eup %3961  ;;  %v1935_v18 = vmul.f32 0.70710677, %v1121_v53  ;;  %3979 = verf.f32 %v1905_v54  ;;  %v5255_v42 = vmul.f32 0.5, %v1119_v55  ;;  %v1937_v47 = vmul.f32 0.70710677, %v1210_v26  ;;  %3756 = vmatmul.mubr.msk.f32.vlgmr.msra.gmra.mxu0 %vm2405_vm1, %v4909_v15  ;;  %v5269_v54 = vpop.f32.mrf.mxu1 }
 0x15e   : > { %6020 = vst [vmem:[#allocation25_spill] sm:$0xff] %v5250_v40  ;;  %6021 = vst [vmem:[#allocation27_spill] sm:$0xff] %v5252_v20  ;;  %v3964_v61 = vpop.eup %3963  ;;  %v1127_v9 = vadd.f32 %v5009_v51, %v4611_v1  ;;  %2794 = vmatprep.subr.mxu1 %v2281_v50  ;;  %v5262_v23 = vmul.f32 %v2218_v58, %v5134_v27  ;;  %v5264_v10 = vmul.f32 0.5, %v1208_v34  ;;  %v1966_v22 = vmul.f32 0.70710677, %v1125_v13  ;;  %v5281_v34 = vpop.f32.mrf.mxu0 }
 0x15f   : > { %v1216_v32 = vadd.f32 %v5025_v28, %v4611_v1  ;;  %2795 = vmatpush1.msra.mxu1 %v5014_v3  ;;  %2899 = vmatprep.mubr.f32.mxu0 %v5994_v45  ;;  %v5273_v51 = vmul.f32 %v2220_v0, %v5136_v49  ;;  %v5275_v55 = vmul.f32 0.5, %v1121_v53  ;;  %v1968_v63 = vmul.f32 0.70710677, %v1214_v21 }
 0x160   : > { %v1131_v27 = vadd.f32 %v5029_v38, %v4606_v52  ;;  %3757 = vmatmul.mubr.msk.f32.vlgmr.msra.gmra.mxu1 %vm2405_vm1, %v4909_v15  ;;  %v3966_v28 = vpop.eup %3965  ;;  %v2250_v3 = vadd.f32 1.0, %v3962_v31  ;;  %v2252_v33 = vadd.f32 1.0, %v3964_v61  ;;  %3981 = verf.f32 %v1935_v18  ;;  %v5296_v18 = vpop.f32.mrf.mxu1 }
 0x161   : > { %6022 = vst [vmem:[#allocation17_spill] sm:$0xff] %v5275_v55  ;;  %v1220_v58 = vadd.f32 %v5051_v16, %v4606_v52  ;;  %2970 = vmatprep.mubr.f32.mxu1 %v5994_v45  ;;  %v3968_v49 = vpop.eup %3967  ;;  %v5286_v53 = vmul.f32 0.5, %v1210_v26  ;;  %3983 = verf.f32 %v1937_v47  ;;  %v5288_v0 = vmul.f32 0.5, %v1125_v13  ;;  %v5302_v61 = vpop.f32.mrf.mxu0 }
 0x162   : > { %v1967_v38 = vmul.f32 0.70710677, %v1127_v9  ;;  %v3970_v60 = vpop.eup %3969  ;;  %3985 = verf.f32 %v1966_v22  ;;  %v5290_v50 = vmul.f32 0.5, %v1214_v21  ;;  %v1969_v20 = vmul.f32 0.70710677, %v1216_v32  ;;  %6024 = vst [vmem:[#allocation26_spill] sm:$0xff] %v5302_v61 }
 0x163   : > { %6023 = vst [vmem:[#allocation18_spill] sm:$0xff] %v5286_v53  ;;  %v5294_v31 = vadd.f32 %v5093_v37, %v4603_v46  ;;  %3987 = verf.f32 %v1968_v63  ;;  %v1998_v16 = vmul.f32 0.70710677, %v1131_v27  ;;  %v5300_v26 = vadd.f32 %v5117_v17, %v4603_v46 }
 0x164   : > { %v2251_v13 = vadd.f32 1.0, %v3966_v28  ;;  %v3972_v47 = vpop.eup %3971  ;;  %v2378_v21 = vmul.f32 %v2250_v3, %v5174_v48  ;;  %v2380_v22 = vmul.f32 %v2252_v33, %v5180_v12  ;;  %v2158_v40 = vadd.f32 1.0, %v3968_v49  ;;  %v5314_v48 = vpop.f32.mrf.mxu1 }
 0x165   : > { %v2000_v53 = vmul.f32 0.70710677, %v1220_v58  ;;  %v2160_v37 = vadd.f32 1.0, %v3970_v60  ;;  %v5306_v55 = vmul.f32 0.5, %v1127_v9  ;;  %3989 = verf.f32 %v1967_v38  ;;  %v5321_v49 = vpop.f32.mrf.mxu0 }
 0x166   : > { %v1133_v63 = vadd.f32 %v5068_v41, %v4606_v52  ;;  %3991 = verf.f32 %v1969_v20  ;;  %v1222_v17 = vadd.f32 %v5084_v35, %v4606_v52  ;;  %v1906_v28 = vmul.f32 0.70710677, %v5294_v31 }
 0x167   : > { %v2379_v61 = vmul.f32 %v2251_v13, %v5194_v25  ;;  %v5316_v12 = vpop.eup %3973  ;;  %v5318_v3 = vmul.f32 0.5, %v1216_v32  ;;  %3993 = verf.f32 %v1998_v16  ;;  %v1908_v9 = vmul.f32 0.70710677, %v5300_v26  ;;  %v6026_v16 = vld [vmem:[#allocation22_spill] sm:$0xff] }
 0x168   : > { %6025 = vst [vmem:[#allocation16_spill] sm:$0xff] %v5316_v12  ;;  %v2253_v33 = vadd.f32 1.0, %v3972_v47  ;;  %v3976_v41 = vpop.eup %3975  ;;  %v5324_v20 = vmul.f32 %v2158_v40, %v5224_v7  ;;  %3995 = verf.f32 %v2000_v53  ;;  %v2219_v35 = vadd.f32 1.0, %v5232_v19 }
 0x169   : > { %2859 = vmatprep.subr.mxu0 %v2379_v61  ;;  %v2221_v25 = vadd.f32 1.0, %v5243_v5  ;;  %v3978_v38 = vpop.eup %3977  ;;  %v5328_v60 = vmul.f32 0.5, %v1131_v27  ;;  %v1999_v32 = vmul.f32 0.70710677, %v1133_v63  ;;  %v5332_v13 = vadd.f32 %v6026_v16, %v4601_v43  ;;  %v5341_v5 = vpop.f32.mrf.mxu1 }
 0x16a   : > { %v2381_v47 = vmul.f32 %v2253_v33, %v5210_v24  ;;  %2860 = vmatpush1.msra.mxu0 %v2378_v21  ;;  %v5335_v12 = vpop.eup %3979  ;;  %v5338_v7 = vmul.f32 %v2160_v37, %v5235_v44  ;;  %v2001_v40 = vmul.f32 0.70710677, %v1222_v17  ;;  %3997 = verf.f32 %v1906_v28  ;;  %v5346_v24 = vpop.f32.mrf.mxu0  ;;  %v6027_v33 = vld [vmem:[#allocation20_spill] sm:$0xff] }
 0x16b   : > { %v2347_v19 = vmul.f32 %v2219_v35, %v5155_v62  ;;  %v2190_v27 = vadd.f32 1.0, %v3976_v41  ;;  %v5343_v53 = vmul.f32 0.5, %v1220_v58  ;;  %3999 = verf.f32 %v1908_v9  ;;  %v6030_v35 = vld [vmem:[#allocation10_spill] sm:$0xff] }
 0x16c   : > { %2930 = vmatprep.subr.mxu1 %v2381_v47  ;;  %v2349_v61 = vmul.f32 %v2221_v25, %v5157_v57  ;;  %v2192_v21 = vadd.f32 1.0, %v3978_v38  ;;  %v1293_v44 = vadd.f32 %v6027_v33, %v4603_v46  ;;  %v2187_v37 = vadd.f32 1.0, %v5198_v29  ;;  %v6028_v29 = vld [vmem:[#allocation11_spill] sm:$0xff]  ;;  %v5367_v38 = vpop.f32.mrf.mxu1 }
 0x16d   : > { %2931 = vmatpush1.msra.mxu1 %v2380_v22  ;;  %2861 = vmatprep.subr.mxu0 %v2347_v19  ;;  %v2189_v62 = vadd.f32 1.0, %v5205_v2  ;;  %v5352_v28 = vpop.eup %3981  ;;  %v5354_v58 = vmul.f32 0.5, %v1133_v63  ;;  %4001 = verf.f32 %v1999_v32  ;;  %v1938_v9 = vmul.f32 0.70710677, %v5332_v13  ;;  %v6029_v2 = vld [vmem:[#allocation19_spill] sm:$0xff] }
 0x16e   : > { %v1386_v57 = vadd.f32 %v5159_v6, %v4601_v43  ;;  %2932 = vmatprep.subr.mxu1 %v2349_v61  ;;  %2862 = vmatpush1.msra.mxu0 %v5262_v23  ;;  %v5360_v41 = vpop.eup %3983  ;;  %4003 = verf.f32 %v2001_v40  ;;  %v1382_v22 = vadd.f32 %v6028_v29, %v4603_v46  ;;  %v2315_v63 = vmul.f32 %v2187_v37, %v6029_v2  ;;  %v5379_v40 = vpop.f32.mrf.mxu0  ;;  %v6032_v37 = vld [vmem:[#allocation23_spill] sm:$0xff] }
 0x16f   : > { %2933 = vmatpush1.msra.mxu1 %v5273_v51  ;;  %v2317_v25 = vmul.f32 %v2189_v62, %v6030_v35  ;;  %v3986_v32 = vpop.eup %3985  ;;  %v5370_v6 = vmul.f32 %v2190_v27, %v5255_v42  ;;  %v5372_v16 = vmul.f32 0.5, %v1222_v17  ;;  %v5376_v23 = vadd.f32 %v5192_v30, %v4611_v1  ;;  %v5400_v29 = vpop.f32.mrf.mxu1 }
 0x170   : > { %v2155_v47 = vadd.f32 1.0, %v5178_v14  ;;  %v3988_v51 = vpop.eup %3987  ;;  %v5382_v19 = vmul.f32 %v2192_v21, %v5264_v10  ;;  %v5385_v61 = vmul.f32 0.5, %v5294_v31  ;;  %v1907_v33 = vmul.f32 0.70710677, %v1293_v44  ;;  %2863 = vmatprep.subr.mxu0 %v2315_v63  ;;  %v6031_v14 = vld [vmem:[#allocation13_spill] sm:$0xff] }
 0x171   : > { %2934 = vmatprep.subr.mxu1 %v2317_v25  ;;  %v2157_v42 = vadd.f32 1.0, %v5187_v56  ;;  %4005 = verf.f32 %v1938_v9  ;;  %v1940_v17 = vmul.f32 0.70710677, %v1386_v57  ;;  %v5390_v30 = vadd.f32 %v5214_v8, %v4611_v1  ;;  %2864 = vmatpush1.msra.mxu0 %v5208_v11  ;;  %v6033_v56 = vld [vmem:[#allocation14_spill] sm:$0xff]  ;;  %v5410_v25 = vpop.f32.mrf.mxu0 }
 0x172   : > { %2935 = vmatpush1.msra.mxu1 %v5221_v59  ;;  %v2283_v10 = vmul.f32 %v2155_v47, %v6031_v14  ;;  %v5395_v27 = vpop.eup %3989  ;;  %v2222_v31 = vadd.f32 1.0, %v3986_v32  ;;  %v1909_v21 = vmul.f32 0.70710677, %v1382_v22  ;;  %v1299_v62 = vadd.f32 %v6032_v37, %v4601_v43  ;;  %v6034_v59 = vld [vmem:[#allocation24_spill] sm:$0xff] }
 0x173   : > { %v2285_v9 = vmul.f32 %v2157_v42, %v6033_v56  ;;  %v5402_v2 = vpop.eup %3991  ;;  %v2224_v8 = vadd.f32 1.0, %v3988_v51  ;;  %v5405_v11 = vmul.f32 0.5, %v5300_v26  ;;  %v1388_v63 = vadd.f32 %v6034_v59, %v4601_v43  ;;  %v6037_v26 = vld [vmem:[#allocation8_spill] sm:$0xff] }
 0x174   : > { %v1970_v35 = vmul.f32 0.70710677, %v5376_v23  ;;  %2865 = vmatprep.subr.mxu0 %v2283_v10  ;;  %v3994_v32 = vpop.eup %3993  ;;  %v5412_v47 = vmul.f32 0.5, %v1293_v44  ;;  %4007 = verf.f32 %v1907_v33  ;;  %v5414_v42 = vmul.f32 0.5, %v1382_v22  ;;  %v6038_v44 = vld [vmem:[#allocation9_spill] sm:$0xff]  ;;  %v5435_v33 = vpop.f32.mrf.mxu1 }
 0x175   : > { %v5417_v14 = vmul.f32 0.5, %v5332_v13  ;;  %2936 = vmatprep.subr.mxu1 %v2285_v9  ;;  %2866 = vmatpush1.msra.mxu0 %v6037_v26  ;;  %v3996_v51 = vpop.eup %3995  ;;  %v5420_v37 = vmul.f32 0.5, %v1386_v57  ;;  %4009 = verf.f32 %v1940_v17  ;;  %v1972_v10 = vmul.f32 0.70710677, %v5390_v30 }
 0x176   : > { %6035 = vst [vmem:[#allocation15_spill] sm:$0xff] %v5412_v47  ;;  %6036 = vst [vmem:[#allocation28_spill] sm:$0xff] %v5414_v42  ;;  %v1305_v56 = vadd.f32 %v5218_v4, %v4611_v1  ;;  %2937 = vmatpush1.msra.mxu1 %v6038_v44  ;;  %3758 = vmatmul.mubr.msk.f32.vlgmr.msra.gmra.mxu0 %vm2405_vm1, %v4909_v15  ;;  %v5429_v13 = vmul.f32 %v2222_v31, %v5288_v0  ;;  %4011 = verf.f32 %v1909_v21  ;;  %v5443_v31 = vpop.f32.mrf.mxu0 }
 0x177   : > { %v1939_v22 = vmul.f32 0.70710677, %v1299_v62  ;;  %v1394_v57 = vadd.f32 %v5241_v39, %v4611_v1  ;;  %3759 = vmatmul.mubr.msk.f32.vlgmr.msra.gmra.mxu1 %vm2405_vm1, %v4909_v15  ;;  %3041 = vmatprep.mubr.f32.mxu0 %v5994_v45  ;;  %v3998_v4 = vpop.eup %3997  ;;  %v5439_v17 = vmul.f32 %v2224_v8, %v5290_v50  ;;  %v1941_v9 = vmul.f32 0.70710677, %v1388_v63 }
 0x178   : > { %4013 = verf.f32 %v1970_v35  ;;  %v1309_v0 = vadd.f32 %v5248_v36, %v4606_v52  ;;  %3112 = vmatprep.mubr.f32.mxu1 %v5994_v45  ;;  %v4000_v39 = vpop.eup %3999  ;;  %v2254_v21 = vadd.f32 1.0, %v3994_v32  ;;  %v2256_v15 = vadd.f32 1.0, %v3996_v51  ;;  %v5457_v51 = vpop.f32.mrf.mxu1 }
 0x179   : > { %v5446_v59 = vmul.f32 0.5, %v1299_v62  ;;  %v1311_v26 = vadd.f32 %v5281_v34, %v4606_v52  ;;  %v5450_v44 = vmul.f32 0.5, %v1388_v63  ;;  %4015 = verf.f32 %v1972_v10  ;;  %6041 = vst [vmem:[#allocation30_spill] sm:$0xff] %v5457_v51  ;;  %v5461_v10 = vpop.f32.mrf.mxu0 }
 0x17a   : > { %v1971_v50 = vmul.f32 0.70710677, %v1305_v56  ;;  %v1398_v8 = vadd.f32 %v5269_v54, %v4606_v52  ;;  %v4002_v36 = vpop.eup %4001  ;;  %v2162_v35 = vadd.f32 1.0, %v3998_v4  ;;  %4017 = verf.f32 %v1939_v22 }
 0x17b   : > { %6039 = vst [vmem:[#allocation29_spill] sm:$0xff] %v5446_v59  ;;  %6040 = vst [vmem:[#allocation21_spill] sm:$0xff] %v5450_v44  ;;  %v5455_v42 = vmul.f32 0.5, %v5376_v23  ;;  %v1973_v32 = vmul.f32 0.70710677, %v1394_v57  ;;  %v4004_v62 = vpop.eup %4003  ;;  %v2164_v47 = vadd.f32 1.0, %v4000_v39  ;;  %4019 = verf.f32 %v1941_v9 }
 0x17c   : > { %v2002_v34 = vmul.f32 0.70710677, %v1309_v0  ;;  %v1400_v63 = vadd.f32 %v5296_v18, %v4606_v52  ;;  %v2382_v54 = vmul.f32 %v2254_v21, %v5328_v60  ;;  %v2384_v4 = vmul.f32 %v2256_v15, %v5343_v53  ;;  %v5475_v60 = vpop.f32.mrf.mxu1 }
 0x17d   : > { %v5466_v22 = vmul.f32 0.5, %v5390_v30  ;;  %v2003_v23 = vmul.f32 0.70710677, %v1311_v26  ;;  %v5468_v44 = vmul.f32 0.5, %v1305_v56  ;;  %4021 = verf.f32 %v1971_v50  ;;  %v6042_v56 = vld [vmem:[#allocation26_spill] sm:$0xff] }
 0x17e   : > { %v5470_v59 = vmul.f32 0.5, %v1394_v57  ;;  %v2004_v9 = vmul.f32 0.70710677, %v1398_v8  ;;  %v4006_v39 = vpop.eup %4005  ;;  %v5473_v51 = vmul.f32 %v2162_v35, %v5385_v61  ;;  %4023 = verf.f32 %v1973_v32  ;;  %v5484_v57 = vpop.f32.mrf.mxu0 }
 0x17f   : > { %v2255_v18 = vadd.f32 1.0, %v4002_v36  ;;  %v2257_v45 = vadd.f32 1.0, %v4004_v62  ;;  %v5478_v53 = vmul.f32 %v2164_v47, %v5405_v11  ;;  %4025 = verf.f32 %v2002_v34 }
 0x180   : > { %v2005_v30 = vmul.f32 0.70710677, %v1400_v63  ;;  %v5482_v21 = vadd.f32 %v6042_v56, %v4603_v46  ;;  %4027 = verf.f32 %v2003_v23  ;;  %v2223_v50 = vadd.f32 1.0, %v5395_v27  ;;  %v5505_v27 = vpop.f32.mrf.mxu1  ;;  %v5516_v23 = vpop.f32.mrf.mxu0 }
 0x181   : > { %v2383_v61 = vmul.f32 %v2255_v18, %v5354_v58  ;;  %v2385_v15 = vmul.f32 %v2257_v45, %v5372_v16  ;;  %v5489_v36 = vpop.eup %4007  ;;  %v2194_v35 = vadd.f32 1.0, %v4006_v39  ;;  %v5491_v11 = vmul.f32 0.5, %v1309_v0 }
 0x182   : > { %6043 = vst [vmem:[#allocation12_spill] sm:$0xff] %v5482_v21  ;;  %4029 = verf.f32 %v2004_v9  ;;  %v5495_v47 = vadd.f32 %v5314_v48, %v4603_v46  ;;  %v4010_v32 = vpop.eup %4009  ;;  %v5497_v62 = vmul.f32 0.5, %v1398_v8  ;;  %v5501_v58 = vadd.f32 %v5321_v49, %v4603_v46 }
 0x183   : > { %3001 = vmatprep.subr.mxu0 %v2383_v61  ;;  %3072 = vmatprep.subr.mxu1 %v2385_v15  ;;  %v2351_v45 = vmul.f32 %v2223_v50, %v5306_v55  ;;  %v2225_v16 = vadd.f32 1.0, %v5402_v2  ;;  %v5507_v0 = vpop.eup %4011  ;;  %v1910_v48 = vmul.f32 0.70710677, %v5482_v21  ;;  %v5512_v8 = vadd.f32 %v5341_v5, %v4603_v46 }
 0x184   : > { %6044 = vst [vmem:[#allocation22_spill] sm:$0xff] %v5495_v47  ;;  %3002 = vmatpush1.msra.mxu0 %v2382_v54  ;;  %3073 = vmatpush1.msra.mxu1 %v2384_v4  ;;  %v2191_v49 = vadd.f32 1.0, %v5352_v28  ;;  %v2193_v34 = vadd.f32 1.0, %v5360_v41  ;;  %v5518_v2 = vmul.f32 0.5, %v1311_v26  ;;  %4031 = verf.f32 %v2005_v30 }
 0x185   : > { %v4014_v55 = vpop.eup %4013  ;;  %v1475_v9 = vadd.f32 %v5346_v24, %v4601_v43  ;;  %3003 = vmatprep.subr.mxu0 %v2351_v45  ;;  %v2353_v39 = vmul.f32 %v2225_v16, %v5318_v3  ;;  %v2196_v5 = vadd.f32 1.0, %v4010_v32  ;;  %v5523_v18 = vmul.f32 0.5, %v1400_v63  ;;  %v6045_v24 = vld [vmem:[#allocation17_spill] sm:$0xff]  ;;  %v6046_v3 = vld [vmem:[#allocation18_spill] sm:$0xff]  ;;  %v5535_v63 = vpop.f32.mrf.mxu1  ;;  %v6047_v45 = vld [vmem:[#allocation16_spill] sm:$0xff] }
 0x186   : > { %v1912_v54 = vmul.f32 0.70710677, %v5495_v47  ;;  %v1564_v28 = vadd.f32 %v5367_v38, %v4601_v43  ;;  %3004 = vmatpush1.msra.mxu0 %v5429_v13  ;;  %v4016_v41 = vpop.eup %4015  ;;  %v5530_v26 = vmul.f32 %v2194_v35, %v5417_v14  ;;  %v1911_v4 = vmul.f32 0.70710677, %v5501_v58  ;;  %v5543_v14 = vpop.f32.mrf.mxu0 }
 0x187   : > { %3074 = vmatprep.subr.mxu1 %v2353_v39  ;;  %v2319_v30 = vmul.f32 %v2191_v49, %v6045_v24  ;;  %v2321_v56 = vmul.f32 %v2193_v34, %v6046_v3  ;;  %v5537_v61 = vpop.eup %4017  ;;  %v2226_v15 = vadd.f32 1.0, %v4014_v55  ;;  %4033 = verf.f32 %v1910_v48  ;;  %v6048_v55 = vld [vmem:[#allocation25_spill] sm:$0xff]  ;;  %v6049_v24 = vld [vmem:[#allocation27_spill] sm:$0xff] }
 0x188   : > { %v1913_v38 = vmul.f32 0.70710677, %v5512_v8  ;;  %v1477_v13 = vadd.f32 %v5379_v40, %v4601_v43  ;;  %3075 = vmatpush1.msra.mxu1 %v5439_v17  ;;  %v5545_v50 = vpop.eup %4019  ;;  %v1942_v35 = vmul.f32 0.70710677, %v1475_v9  ;;  %v1566_v32 = vadd.f32 %v5400_v29, %v4601_v43 }
 0x189   : > { %3005 = vmatprep.subr.mxu0 %v2319_v30  ;;  %3076 = vmatprep.subr.mxu1 %v2321_v56  ;;  %v2159_v16 = vadd.f32 1.0, %v6047_v45  ;;  %v2161_v48 = vadd.f32 1.0, %v5335_v12  ;;  %v5552_v49 = vmul.f32 %v2196_v5, %v5420_v37  ;;  %v2228_v40 = vadd.f32 1.0, %v4016_v41  ;;  %v1737_v30 = vpop.f32.mrf.mxu1 }
 0x18a   : > { %4035 = verf.f32 %v1912_v54  ;;  %v1944_v17 = vmul.f32 0.70710677, %v1564_v28  ;;  %3006 = vmatpush1.msra.mxu0 %v5370_v6  ;;  %3077 = vmatpush1.msra.mxu1 %v5382_v19  ;;  %v5556_v34 = vpop.eup %4021  ;;  %v1481_v29 = vadd.f32 %v5410_v25, %v4611_v1  ;;  %v5564_v5 = vmul.f32 0.5, %v1475_v9  ;;  %v1652_v19 = vpop.f32.mrf.mxu0 }
 0x18b   : > { %4037 = verf.f32 %v1911_v4  ;;  %v2287_v39 = vmul.f32 %v2159_v16, %v6048_v55  ;;  %v2289_v12 = vmul.f32 %v2161_v48, %v6049_v24  ;;  %v5562_v37 = vpop.eup %4023  ;;  %v1943_v54 = vmul.f32 0.70710677, %v1477_v13 }
 0x18c   : > { %4039 = verf.f32 %v1913_v38  ;;  %6050 = vst [vmem:[#allocation20_spill] sm:$0xff] %v5564_v5  ;;  %v5568_v6 = vadd.f32 %v5461_v10, %v4606_v52  ;;  %v4026_v41 = vpop.eup %4025  ;;  %v5571_v4 = vmul.f32 %v2226_v15, %v5455_v42  ;;  %v1945_v25 = vmul.f32 0.70710677, %v1566_v32 }
 0x18d   : > { %4041 = verf.f32 %v1942_v35  ;;  %3007 = vmatprep.subr.mxu0 %v2287_v39  ;;  %3078 = vmatprep.subr.mxu1 %v2289_v12  ;;  %v5575_v3 = vadd.f32 %v5475_v60, %v4606_v52  ;;  %v4028_v9 = vpop.eup %4027  ;;  %v5578_v56 = vmul.f32 %v2228_v40, %v5466_v22  ;;  %v5580_v38 = vmul.f32 0.5, %v1564_v28  ;;  %v5595_v22 = vld [vmem:[%s5933_s3] sm:$0xff] }
 0x18e   : > { %4043 = verf.f32 %v1944_v17  ;;  %3008 = vmatpush1.msra.mxu0 %v5324_v20  ;;  %3079 = vmatpush1.msra.mxu1 %v5338_v7  ;;  %v5586_v42 = vadd.f32 %v5484_v57, %v4606_v52  ;;  %v5588_v15 = vmul.f32 0.5, %v1477_v13  ;;  %v1974_v60 = vmul.f32 0.70710677, %v1481_v29  ;;  %v5605_v7 = vpop.f32.mrf.mxu1  ;;  %v1654_v13 = vpop.f32.mrf.mxu0 }
 0x18f   : > { %6051 = vst [vmem:[#allocation11_spill] sm:$0xff] %v5580_v38  ;;  %v4030_v10 = vpop.eup %4029  ;;  %v1570_v35 = vadd.f32 %v5435_v33, %v4611_v1  ;;  %3760 = vmatmul.mubr.msk.f32.vlgmr.msra.gmra.mxu0 %vm2405_vm1, %v5595_v22  ;;  %3761 = vmatmul.mubr.msk.f32.vlgmr.msra.gmra.mxu1 %vm2405_vm1, %v5595_v22  ;;  %v5603_v20 = vadd.f32 %v5505_v27, %v4606_v52  ;;  %4045 = verf.f32 %v1943_v54  ;;  %v5607_v57 = vmul.f32 0.5, %v1566_v32  ;;  %v6053_v32 = vld [vmem:[#allocation30_spill] sm:$0xff] }
 0x190   : > { %v1483_v33 = vadd.f32 %v5443_v31, %v4611_v1  ;;  %v2006_v28 = vmul.f32 0.70710677, %v5568_v6  ;;  %v6052_v45 = vmov 0.0   ;;  %v2258_v16 = vadd.f32 1.0, %v4026_v41  ;;  %v1743_v41 = vpop.f32.mrf.mxu1 }
 0x191   : > { %3183 = vmatprep.mubr.f32.mxu0 %v6052_v45  ;;  %3254 = vmatprep.mubr.f32.mxu1 %v6052_v45  ;;  %4047 = verf.f32 %v1945_v25  ;;  %v2008_v27 = vmul.f32 0.70710677, %v5575_v3  ;;  %v2259_v48 = vadd.f32 1.0, %v4028_v9  ;;  %v4032_v40 = vpop.eup %4031  ;;  %v2260_v17 = vadd.f32 1.0, %v4030_v10  ;;  %v1658_v10 = vpop.f32.mrf.mxu0 }
 0x192   : > { %v5615_v55 = vmul.f32 0.5, %v1481_v29  ;;  %v1572_v39 = vadd.f32 %v6053_v32, %v4611_v1  ;;  %v2007_v31 = vmul.f32 0.70710677, %v5586_v42  ;;  %4049 = verf.f32 %v1974_v60 }
 0x193   : > { %v5620_v24 = vmul.f32 0.5, %v1570_v35  ;;  %v2009_v12 = vmul.f32 0.70710677, %v5603_v20  ;;  %v5625_v54 = vadd.f32 %v5516_v23, %v4603_v46  ;;  %v1976_v25 = vmul.f32 0.70710677, %v1570_v35 }
 0x194   : > { %v1975_v9 = vmul.f32 0.70710677, %v1483_v33  ;;  %4051 = verf.f32 %v2006_v28  ;;  %v5629_v29 = vadd.f32 %v5543_v14, %v4603_v46  ;;  %v4034_v32 = vpop.eup %4033  ;;  %v5632_v60 = vadd.f32 %v1737_v30, %v4603_v46 }
 0x195   : > { %4053 = verf.f32 %v2008_v27  ;;  %v2387_v38 = vmul.f32 %v2259_v48, %v5518_v2  ;;  %v2261_v5 = vadd.f32 1.0, %v4032_v40  ;;  %v2386_v23 = vmul.f32 %v2258_v16, %v5491_v11  ;;  %v1747_v27 = vpop.f32.mrf.mxu1  ;;  %v1660_v48 = vpop.f32.mrf.mxu0 }
 0x196   : > { %v1977_v47 = vmul.f32 0.70710677, %v1572_v39  ;;  %4055 = verf.f32 %v2007_v31  ;;  %v5637_v35 = vadd.f32 %v1652_v19, %v4601_v43  ;;  %v2388_v14 = vmul.f32 %v2260_v17, %v5497_v62 }
 0x197   : > { %v5639_v28 = vpop.eup %4035  ;;  %v5642_v21 = vmul.f32 0.5, %v1483_v33  ;;  %4057 = verf.f32 %v2009_v12  ;;  %v1914_v30 = vmul.f32 0.70710677, %v5625_v54  ;;  %3143 = vmatprep.subr.mxu0 %v2387_v38  ;;  %v1915_v11 = vmul.f32 0.70710677, %v5629_v29 }
 0x198   : > { %v5645_v2 = vpop.eup %4037  ;;  %4059 = verf.f32 %v1976_v25  ;;  %v2389_v16 = vmul.f32 %v2261_v5, %v5523_v18  ;;  %v5650_v19 = vadd.f32 %v1654_v13, %v4601_v43  ;;  %3144 = vmatpush1.msra.mxu0 %v2386_v23  ;;  %v1917_v33 = vmul.f32 0.70710677, %v5632_v60  ;;  %v1749_v25 = vpop.f32.mrf.mxu1 }
 0x199   : > { %v5652_v62 = vpop.eup %4039  ;;  %4061 = verf.f32 %v1975_v9  ;;  %v5656_v38 = vadd.f32 %v1743_v41, %v4601_v43  ;;  %v2227_v40 = vadd.f32 1.0, %v5556_v34  ;;  %v5661_v31 = vadd.f32 1.0, %v4034_v32 }
 0x19a   : > { %v5659_v17 = vpop.eup %4041  ;;  %4063 = verf.f32 %v1977_v47  ;;  %v1946_v18 = vmul.f32 0.70710677, %v5637_v35  ;;  %3214 = vmatprep.subr.mxu1 %v2389_v16  ;;  %v2229_v5 = vadd.f32 1.0, %v5562_v37  ;;  %v5667_v12 = vmul.f32 0.5, %v1572_v39  ;;  %v1664_v37 = vpop.f32.mrf.mxu0 }
 0x19b   : > { %v5665_v13 = vpop.eup %4043  ;;  %4065 = verf.f32 %v1914_v30  ;;  %3215 = vmatpush1.msra.mxu1 %v2388_v14  ;;  %v2355_v41 = vmul.f32 %v2227_v40, %v5468_v44  ;;  %v5671_v34 = vadd.f32 %v1658_v10, %v4611_v1  ;;  %v1947_v47 = vmul.f32 0.70710677, %v5650_v19 }
 0x19c   : > { %4067 = verf.f32 %v1915_v11  ;;  %v2357_v9 = vmul.f32 %v2229_v5, %v5470_v59  ;;  %v5676_v32 = vadd.f32 %v1747_v27, %v4611_v1  ;;  %v5678_v23 = vpop.eup %4045  ;;  %v5681_v39 = vmul.f32 0.5, %v5568_v6 }
 0x19d   : > { %v5684_v44 = vmul.f32 0.5, %v5575_v3  ;;  %4069 = verf.f32 %v1917_v33  ;;  %v1949_v10 = vmul.f32 0.70710677, %v5656_v38  ;;  %3145 = vmatprep.subr.mxu0 %v2355_v41  ;;  %v5691_v59 = vadd.f32 %v5535_v63, %v4603_v46  ;;  %v1753_v63 = vpop.f32.mrf.mxu1 }
 0x19e   : > { %v5687_v14 = vpop.eup %4047  ;;  %4071 = verf.f32 %v1946_v18  ;;  %3216 = vmatprep.subr.mxu1 %v2357_v9  ;;  %3146 = vmatpush1.msra.mxu0 %v5571_v4  ;;  %v2195_v6 = vadd.f32 1.0, %v5537_v61  ;;  %v2197_v30 = vadd.f32 1.0, %v5545_v50  ;;  %v1978_v3 = vmul.f32 0.70710677, %v5671_v34  ;;  %v6054_v61 = vld [vmem:[#allocation29_spill] sm:$0xff]  ;;  %v1666_v18 = vpop.f32.mrf.mxu0 }
 0x19f   : > { %3217 = vmatpush1.msra.mxu1 %v5578_v56  ;;  %v5699_v27 = vadd.f32 %v1660_v48, %v4611_v1  ;;  %v5702_v11 = vadd.f32 %v1749_v25, %v4611_v1  ;;  %v2163_v46 = vadd.f32 1.0, %v5489_v36  ;;  %v4050_v16 = vpop.eup %4049  ;;  %4073 = verf.f32 %v1947_v47  ;;  %v6055_v50 = vld [vmem:[#allocation21_spill] sm:$0xff]  ;;  %v6056_v25 = vld [vmem:[#allocation15_spill] sm:$0xff] }
 0x1a0   : > { %v1980_v4 = vmul.f32 0.70710677, %v5676_v32  ;;  %v2323_v33 = vmul.f32 %v2195_v6, %v6054_v61  ;;  %v2325_v40 = vmul.f32 %v2197_v30, %v6055_v50  ;;  %v1879_v56 = vmul.f32 0.5, %v5586_v42 }
 0x1a1   : > { %v4052_v5 = vpop.eup %4051  ;;  %v1881_v48 = vmul.f32 0.5, %v5603_v20  ;;  %4075 = verf.f32 %v1949_v10  ;;  %v1979_v1 = vmul.f32 0.70710677, %v5699_v27  ;;  %v1981_v36 = vmul.f32 0.70710677, %v5702_v11 }
 0x1a2   : > { %v4054_v41 = vpop.eup %4053  ;;  %3147 = vmatprep.subr.mxu0 %v2323_v33  ;;  %3218 = vmatprep.subr.mxu1 %v2325_v40  ;;  %v2291_v47 = vmul.f32 %v2163_v46, %v6056_v25  ;;  %v2165_v9 = vadd.f32 1.0, %v5507_v0  ;;  %v5715_v6 = vadd.f32 %v1664_v37, %v4606_v52  ;;  %v5719_v42 = vadd.f32 %v5605_v7, %v4601_v43  ;;  %v1755_v0 = vpop.f32.mrf.mxu1  ;;  %v6057_v43 = vld [vmem:[#allocation28_spill] sm:$0xff] }
 0x1a3   : > { %v4056_v30 = vpop.eup %4055  ;;  %4077 = verf.f32 %v1978_v3  ;;  %3148 = vmatpush1.msra.mxu0 %v5530_v26  ;;  %3219 = vmatpush1.msra.mxu1 %v5552_v49  ;;  %v5724_v20 = vadd.f32 %v1753_v63, %v4606_v52  ;;  %v5727_v10 = vadd.f32 %v1666_v18, %v4606_v52  ;;  %v2262_v37 = vadd.f32 1.0, %v4052_v5 }
 0x1a4   : > { %v4058_v46 = vpop.eup %4057  ;;  %v1916_v61 = vmul.f32 0.70710677, %v5691_v59  ;;  %4079 = verf.f32 %v1980_v4  ;;  %3149 = vmatprep.subr.mxu0 %v2291_v47  ;;  %v2293_v7 = vmul.f32 %v2165_v9, %v6057_v43  ;;  %v2264_v33 = vadd.f32 1.0, %v4054_v41 }
 0x1a5   : > { %v4060_v3 = vpop.eup %4059  ;;  %4081 = verf.f32 %v1979_v1  ;;  %v2010_v26 = vmul.f32 0.70710677, %v5715_v6  ;;  %v2012_v49 = vmul.f32 0.70710677, %v5724_v20  ;;  %3150 = vmatpush1.msra.mxu0 %v5473_v51  ;;  %v2230_v50 = vadd.f32 1.0, %v4050_v16 }
 0x1a6   : > { %v4062_v63 = vpop.eup %4061  ;;  %4083 = verf.f32 %v1981_v36  ;;  %3220 = vmatprep.subr.mxu1 %v2293_v7  ;;  %3762 = vmatmul.mubr.msk.f32.vlgmr.msra.gmra.mxu0 %vm2405_vm1, %v5595_v22  ;;  %v2011_v4 = vmul.f32 0.70710677, %v5727_v10  ;;  %v5738_v40 = vadd.f32 %v1755_v0, %v4606_v52  ;;  %v1948_v5 = vmul.f32 0.70710677, %v5719_v42 }
 0x1a7   : > { %v4064_v18 = vpop.eup %4063  ;;  %4085 = verf.f32 %v2010_v26  ;;  %3221 = vmatpush1.msra.mxu1 %v5478_v53  ;;  %v2263_v1 = vadd.f32 1.0, %v4056_v30  ;;  %v2265_v51 = vadd.f32 1.0, %v4058_v46  ;;  %3325 = vmatprep.mubr.f32.mxu0 %v6052_v45  ;;  %v2232_v41 = vadd.f32 1.0, %v4060_v3 }
 0x1a8   : > { %v5743_v16 = vpop.eup %4065  ;;  %v2390_v36 = vmul.f32 %v2262_v37, %v5681_v39  ;;  %4087 = verf.f32 %v2012_v49  ;;  %3763 = vmatmul.mubr.msk.f32.vlgmr.msra.gmra.mxu1 %vm2405_vm1, %v5595_v22  ;;  %v2013_v52 = vmul.f32 0.70710677, %v5738_v40  ;;  %v2392_v47 = vmul.f32 %v2264_v33, %v5684_v44 }
 0x1a9   : > { %v5749_v25 = vpop.eup %4067  ;;  %4089 = verf.f32 %v2011_v4  ;;  %v2391_v53 = vmul.f32 %v2263_v1, %v1879_v56  ;;  %v2393_v9 = vmul.f32 %v2265_v51, %v1881_v48  ;;  %3396 = vmatprep.mubr.f32.mxu1 %v6052_v45  ;;  %v2231_v0 = vadd.f32 1.0, %v4062_v63 }
 0x1aa   : > { %v5753_v30 = vpop.eup %4069  ;;  %4091 = verf.f32 %v2013_v52  ;;  %v2233_v39 = vadd.f32 1.0, %v4064_v18  ;;  %v2199_v46 = vadd.f32 1.0, %v5678_v23  ;;  %v2198_v43 = vadd.f32 1.0, %v5659_v17 }
 0x1ab   : > { %v5756_v37 = vpop.eup %4071  ;;  %v2200_v7 = vadd.f32 1.0, %v5665_v13  ;;  %4093 = verf.f32 %v1948_v5  ;;  %3285 = vmatprep.subr.mxu0 %v2391_v53  ;;  %3356 = vmatprep.subr.mxu1 %v2393_v9  ;;  %v2201_v44 = vadd.f32 1.0, %v5687_v14  ;;  %v2359_v56 = vmul.f32 %v2231_v0, %v5642_v21 }
 0x1ac   : > { %3286 = vmatpush1.msra.mxu0 %v2390_v36  ;;  %3357 = vmatpush1.msra.mxu1 %v2392_v47  ;;  %v2361_v48 = vmul.f32 %v2233_v39, %v5667_v12  ;;  %v2167_v3 = vadd.f32 1.0, %v5645_v2  ;;  %v2169_v23 = vadd.f32 1.0, %v5652_v62  ;;  %v5765_v33 = vpop.eup %4073  ;;  %v2168_v17 = vadd.f32 1.0, %v5639_v28  ;;  %v6058_v12 = vld [vmem:[#allocation12_spill] sm:$0xff]  ;;  %v6059_v28 = vld [vmem:[#allocation22_spill] sm:$0xff] }
 0x1ad   : > { %v2358_v13 = vmul.f32 %v2230_v50, %v5615_v55  ;;  %v2360_v26 = vmul.f32 %v2232_v41, %v5620_v24  ;;  %4095 = verf.f32 %v1916_v61  ;;  %v1783_v49 = vmul.f32 0.5, %v5501_v58  ;;  %3287 = vmatprep.subr.mxu0 %v2359_v56  ;;  %v6060_v55 = vld [vmem:[#allocation20_spill] sm:$0xff]  ;;  %v6061_v24 = vld [vmem:[#allocation11_spill] sm:$0xff] }
 0x1ae   : > { %v5770_v14 = vpop.eup %4075  ;;  %v1785_v21 = vmul.f32 0.5, %v5512_v8  ;;  %3358 = vmatprep.subr.mxu1 %v2361_v48  ;;  %v2327_v2 = vmul.f32 %v2199_v46, %v5588_v15  ;;  %v2329_v62 = vmul.f32 %v2201_v44, %v5607_v57  ;;  %v1782_v63 = vmul.f32 0.5, %v6058_v12 }
 0x1af   : > { %v1784_v4 = vmul.f32 0.5, %v6059_v28  ;;  %v2326_v50 = vmul.f32 %v2198_v43, %v6060_v55  ;;  %v2328_v61 = vmul.f32 %v2200_v7, %v6061_v24  ;;  %3288 = vmatpush1.msra.mxu0 %v2358_v13  ;;  %3359 = vmatpush1.msra.mxu1 %v2360_v26  ;;  %v2295_v58 = vmul.f32 %v2167_v3, %v1783_v49 }
 0x1b0   : > { %v4078_v18 = vpop.eup %4077  ;;  %3289 = vmatprep.subr.mxu0 %v2327_v2  ;;  %3360 = vmatprep.subr.mxu1 %v2329_v62  ;;  %v2297_v8 = vmul.f32 %v2169_v23, %v1785_v21  ;;  %v2294_v15 = vmul.f32 %v5661_v31, %v1782_v63  ;;  %v1787_v36 = vmul.f32 0.5, %v5629_v29  ;;  %v1818_v52 = vmul.f32 0.5, %v5637_v35 }
 0x1b1   : > { %v4080_v5 = vpop.eup %4079  ;;  %v2296_v1 = vmul.f32 %v2168_v17, %v1784_v4  ;;  %3290 = vmatpush1.msra.mxu0 %v2326_v50  ;;  %3361 = vmatpush1.msra.mxu1 %v2328_v61  ;;  %v1819_v47 = vmul.f32 0.5, %v5650_v19  ;;  %v1821_v53 = vmul.f32 0.5, %v5656_v38  ;;  %v1850_v9 = vmul.f32 0.5, %v5671_v34 }
 0x1b2   : > { %v4082_v57 = vpop.eup %4081  ;;  %3291 = vmatprep.subr.mxu0 %v2295_v58  ;;  %3362 = vmatprep.subr.mxu1 %v2297_v8  ;;  %v1852_v0 = vmul.f32 0.5, %v5676_v32  ;;  %v1851_v35 = vmul.f32 0.5, %v5699_v27  ;;  %v1853_v39 = vmul.f32 0.5, %v5702_v11  ;;  %v1882_v46 = vmul.f32 0.5, %v5715_v6 }
 0x1b3   : > { %v4084_v51 = vpop.eup %4083  ;;  %3292 = vmatpush1.msra.mxu0 %v2294_v15  ;;  %3363 = vmatpush1.msra.mxu1 %v2296_v1  ;;  %v1883_v38 = vmul.f32 0.5, %v5727_v10  ;;  %v2235_v34 = vadd.f32 1.0, %v4082_v57  ;;  %v2234_v32 = vadd.f32 1.0, %v4078_v18  ;;  %v1885_v48 = vmul.f32 0.5, %v5738_v40 }
 0x1b4   : > { %v4086_v41 = vpop.eup %4085  ;;  %3764 = vmatmul.mubr.msk.f32.vlgmr.msra.gmra.mxu0 %vm2405_vm1, %v5595_v22  ;;  %3765 = vmatmul.mubr.msk.f32.vlgmr.msra.gmra.mxu1 %vm2405_vm1, %v5595_v22  ;;  %v2236_v23 = vadd.f32 1.0, %v4080_v5  ;;  %v1884_v27 = vmul.f32 0.5, %v5724_v20  ;;  %v2203_v11 = vadd.f32 1.0, %v5765_v33  ;;  %v2202_v13 = vadd.f32 1.0, %v5756_v37 }
 0x1b5   : > { %v4088_v31 = vpop.eup %4087  ;;  %3467 = vmatprep.mubr.f32.mxu0 %v6052_v45  ;;  %3538 = vmatprep.mubr.f32.mxu1 %v6052_v45  ;;  %v2266_v43 = vadd.f32 1.0, %v4086_v41  ;;  %v2237_v45 = vadd.f32 1.0, %v4084_v51  ;;  %v2205_v10 = vadd.f32 1.0, %v5770_v14  ;;  %v2363_v62 = vmul.f32 %v2235_v34, %v1851_v35 }
 0x1b6   : > { %v4090_v29 = vpop.eup %4089  ;;  %v2268_v19 = vadd.f32 1.0, %v4088_v31  ;;  %v2171_v40 = vadd.f32 1.0, %v5749_v25  ;;  %v2170_v12 = vadd.f32 1.0, %v5743_v16  ;;  %v2362_v63 = vmul.f32 %v2234_v32, %v1850_v9 }
 0x1b7   : > { %v4092_v7 = vpop.eup %4091  ;;  %v2267_v44 = vadd.f32 1.0, %v4090_v29  ;;  %v2394_v26 = vmul.f32 %v2266_v43, %v1882_v46  ;;  %v2365_v20 = vmul.f32 %v2237_v45, %v1853_v39  ;;  %v2173_v33 = vadd.f32 1.0, %v5753_v30 }
 0x1b8   : > { %v4094_v56 = vpop.eup %4093  ;;  %v2269_v3 = vadd.f32 1.0, %v4092_v7  ;;  %v2396_v2 = vmul.f32 %v2268_v19, %v1884_v27  ;;  %v1820_v37 = vmul.f32 0.5, %v5719_v42  ;;  %v2364_v4 = vmul.f32 %v2236_v23, %v1852_v0 }
 0x1b9   : > { %v2395_v17 = vmul.f32 %v2267_v44, %v1883_v38  ;;  %v2204_v21 = vadd.f32 1.0, %v4094_v56  ;;  %v2331_v14 = vmul.f32 %v2203_v11, %v1819_v47  ;;  %v1786_v55 = vmul.f32 0.5, %v5625_v54  ;;  %v5813_v54 = vpop.permute.xlu0 %2402 }
 0x1ba   : > { %v4096_v6 = vpop.eup %4095  ;;  %v2397_v49 = vmul.f32 %v2269_v3, %v1885_v48  ;;  %v1789_v50 = vmul.f32 0.5, %v5632_v60  ;;  %v2330_v25 = vmul.f32 %v2202_v13, %v1818_v52  ;;  %v2333_v16 = vmul.f32 %v2205_v10, %v1821_v53 }
 0x1bb   : > { %3427 = vmatprep.subr.mxu0 %v2395_v17  ;;  %v2172_v28 = vadd.f32 1.0, %v4096_v6  ;;  %v1788_v24 = vmul.f32 0.5, %v5691_v59  ;;  %v2332_v61 = vmul.f32 %v2204_v21, %v1820_v37  ;;  %v2299_v30 = vmul.f32 %v2171_v40, %v1787_v36 }
 0x1bc   : > { %3498 = vmatprep.subr.mxu1 %v2397_v49  ;;  %3428 = vmatpush1.msra.mxu0 %v2394_v26  ;;  %v2298_v18 = vmul.f32 %v2170_v12, %v1786_v55  ;;  %v2301_v42 = vmul.f32 %v2173_v33, %v1789_v50 }
 0x1bd   : > { %3499 = vmatpush1.msra.mxu1 %v2396_v2  ;;  %3429 = vmatprep.subr.mxu0 %v2363_v62  ;;  %v2300_v58 = vmul.f32 %v2172_v28, %v1788_v24 }
 0x1be   : > { %3500 = vmatprep.subr.mxu1 %v2365_v20  ;;  %3430 = vmatpush1.msra.mxu0 %v2362_v63 }
 0x1bf   : > { %3501 = vmatpush1.msra.mxu1 %v2364_v4  ;;  %3431 = vmatprep.subr.mxu0 %v2331_v14 }
 0x1c0   : > { %3502 = vmatprep.subr.mxu1 %v2333_v16  ;;  %3432 = vmatpush1.msra.mxu0 %v2330_v25 }
 0x1c1   : > { %3503 = vmatpush1.msra.mxu1 %v2332_v61  ;;  %3433 = vmatprep.subr.mxu0 %v2299_v30 }
 0x1c2   : > { %3504 = vmatprep.subr.mxu1 %v2301_v42  ;;  %3434 = vmatpush1.msra.mxu0 %v2298_v18 }
 0x1c3   : > { %3505 = vmatpush1.msra.mxu1 %v2300_v58  ;;  %3766 = vmatmul.mubr.msk.f32.vlgmr.msra.gmra.mxu0 %vm2405_vm1, %v5595_v22 }
 0x1c4   : > { %3767 = vmatmul.mubr.msk.f32.vlgmr.msra.gmra.mxu1 %vm2405_vm1, %v5595_v22 }
 0x1ec   : > { %v2475_v60 = vpop.f32.mrf.mxu0 }
 0x1ed   : > { %v2546_v59 = vpop.f32.mrf.mxu1  ;;  %v2476_v8 = vadd.f32 %v2475_v60, %v5813_v54 }
 0x1ee   : > { %v2547_v5 = vadd.f32 %v2546_v59, %v5813_v54  ;;  %v2477_v15 = vpop.f32.mrf.mxu0 }
 0x1ef   : > { %v2548_v1 = vpop.f32.mrf.mxu1  ;;  %3545 = vst [vmem:[%s5819_s29] sm:$0xff] %v2476_v8  ;;  %v2478_v22 = vadd.f32 %v2477_v15, %v5813_v54 }
 0x1f0   : > { %3547 = vst [vmem:[%s5819_s29 + $0x10] sm:$0xff] %v2547_v5  ;;  %v2549_v57 = vadd.f32 %v2548_v1, %v5813_v54 }
 0x1f1   : > { %3546 = vst [vmem:[%s5819_s29 + $0x8] sm:$0xff] %v2478_v22 }
 0x1f2   : > { %3548 = vst [vmem:[%s5819_s29 + $0x18] sm:$0xff] %v2549_v57 }
 0x206   : > { %v2617_v51 = vpop.f32.mrf.mxu0  ;;  %v2688_v41 = vpop.f32.mrf.mxu1 }
 0x207   : > { %v2618_v36 = vadd.f32 %v2617_v51, %v5813_v54  ;;  %v2689_v52 = vadd.f32 %v2688_v41, %v5813_v54 }
 0x208   : > { %v2619_v31 = vpop.f32.mrf.mxu0  ;;  %v2690_v47 = vpop.f32.mrf.mxu1 }
 0x209   : > { %3549 = vst [vmem:[%s5819_s29 + $0x20] sm:$0xff] %v2618_v36  ;;  %3551 = vst [vmem:[%s5819_s29 + $0x30] sm:$0xff] %v2689_v52  ;;  %v2620_v53 = vadd.f32 %v2619_v31, %v5813_v54  ;;  %v2691_v9 = vadd.f32 %v2690_v47, %v5813_v54 }
 0x20b   : > { %3550 = vst [vmem:[%s5819_s29 + $0x28] sm:$0xff] %v2620_v53  ;;  %3552 = vst [vmem:[%s5819_s29 + $0x38] sm:$0xff] %v2691_v9 }
 0x21d   : > { %v2759_v0 = vpop.f32.mrf.mxu0 }
 0x21e   : > { %v2760_v29 = vadd.f32 %v2759_v0, %v5813_v54 }
 0x21f   : > { %v2761_v39 = vpop.f32.mrf.mxu0 }
 0x220   : > { %v2830_v35 = vpop.f32.mrf.mxu1  ;;  %3553 = vst [vmem:[%s5819_s29 + $0x40] sm:$0xff] %v2760_v29  ;;  %v2762_v43 = vadd.f32 %v2761_v39, %v5813_v54 }
 0x221   : > { %v2831_v46 = vadd.f32 %v2830_v35, %v5813_v54 }
 0x222   : > { %v2832_v7 = vpop.f32.mrf.mxu1  ;;  %3554 = vst [vmem:[%s5819_s29 + $0x48] sm:$0xff] %v2762_v43 }
 0x223   : > { %3555 = vst [vmem:[%s5819_s29 + $0x50] sm:$0xff] %v2831_v46  ;;  %v2833_v19 = vadd.f32 %v2832_v7, %v5813_v54 }
 0x225   : > { %3556 = vst [vmem:[%s5819_s29 + $0x58] sm:$0xff] %v2833_v19 }
 0x236   : > { %v2901_v38 = vpop.f32.mrf.mxu0 }
 0x237   : > { %v2902_v44 = vadd.f32 %v2901_v38, %v5813_v54  ;;  %v2972_v34 = vpop.f32.mrf.mxu1 }
 0x238   : > { %v2973_v56 = vadd.f32 %v2972_v34, %v5813_v54  ;;  %v2903_v32 = vpop.f32.mrf.mxu0 }
 0x239   : > { %3557 = vst [vmem:[%s5819_s29 + $0x60] sm:$0xff] %v2902_v44  ;;  %v2904_v48 = vadd.f32 %v2903_v32, %v5813_v54  ;;  %v2974_v3 = vpop.f32.mrf.mxu1 }
 0x23a   : > { %3559 = vst [vmem:[%s5819_s29 + $0x70] sm:$0xff] %v2973_v56  ;;  %v2975_v45 = vadd.f32 %v2974_v3, %v5813_v54 }
 0x23b   : > { %3558 = vst [vmem:[%s5819_s29 + $0x68] sm:$0xff] %v2904_v48 }
 0x23c   : > { %3560 = vst [vmem:[%s5819_s29 + $0x78] sm:$0xff] %v2975_v45 }
 0x24f   : > { %v3043_v23 = vpop.f32.mrf.mxu0  ;;  %v3114_v27 = vpop.f32.mrf.mxu1 }
 0x250   : > { %v3044_v17 = vadd.f32 %v3043_v23, %v5813_v54  ;;  %v3115_v11 = vadd.f32 %v3114_v27, %v5813_v54 }
 0x251   : > { %v3045_v6 = vpop.f32.mrf.mxu0  ;;  %v3116_v13 = vpop.f32.mrf.mxu1 }
 0x252   : > { %3561 = vst [vmem:[%s5819_s29 + $0x80] sm:$0xff] %v3044_v17  ;;  %3563 = vst [vmem:[%s5819_s29 + $0x90] sm:$0xff] %v3115_v11  ;;  %v3046_v26 = vadd.f32 %v3045_v6, %v5813_v54  ;;  %v3117_v49 = vadd.f32 %v3116_v13, %v5813_v54 }
 0x254   : > { %3562 = vst [vmem:[%s5819_s29 + $0x88] sm:$0xff] %v3046_v26  ;;  %3564 = vst [vmem:[%s5819_s29 + $0x98] sm:$0xff] %v3117_v49 }
 0x266   : > { %v3185_v10 = vpop.f32.mrf.mxu0 }
 0x267   : > { %v3186_v21 = vadd.f32 %v3185_v10, %v5813_v54 }
 0x268   : > { %v3256_v2 = vpop.f32.mrf.mxu1  ;;  %v3187_v62 = vpop.f32.mrf.mxu0 }
 0x269   : > { %3565 = vst [vmem:[%s5819_s29 + $0xa0] sm:$0xff] %v3186_v21  ;;  %v3257_v40 = vadd.f32 %v3256_v2, %v5813_v54  ;;  %v3188_v12 = vadd.f32 %v3187_v62, %v5813_v54 }
 0x26a   : > { %v3258_v63 = vpop.f32.mrf.mxu1 }
 0x26b   : > { %3567 = vst [vmem:[%s5819_s29 + $0xb0] sm:$0xff] %v3257_v40  ;;  %3566 = vst [vmem:[%s5819_s29 + $0xa8] sm:$0xff] %v3188_v12  ;;  %v3259_v20 = vadd.f32 %v3258_v63, %v5813_v54 }
 0x26d   : > { %3568 = vst [vmem:[%s5819_s29 + $0xb8] sm:$0xff] %v3259_v20 }
 0x274   : > { %v3327_v33 = vpop.f32.mrf.mxu0  ;;  %v3398_v28 = vpop.f32.mrf.mxu1 }
 0x275   : > { %v3328_v37 = vadd.f32 %v3327_v33, %v5813_v54  ;;  %v3399_v4 = vadd.f32 %v3398_v28, %v5813_v54 }
 0x276   : > { %v3329_v14 = vpop.f32.mrf.mxu0  ;;  %v3400_v55 = vpop.f32.mrf.mxu1 }
 0x277   : > { %3569 = vst [vmem:[%s5819_s29 + $0xc0] sm:$0xff] %v3328_v37  ;;  %3571 = vst [vmem:[%s5819_s29 + $0xd0] sm:$0xff] %v3399_v4  ;;  %v3330_v50 = vadd.f32 %v3329_v14, %v5813_v54  ;;  %v3401_v25 = vadd.f32 %v3400_v55, %v5813_v54 }
 0x279   : > { %3570 = vst [vmem:[%s5819_s29 + $0xc8] sm:$0xff] %v3330_v50  ;;  %3572 = vst [vmem:[%s5819_s29 + $0xd8] sm:$0xff] %v3401_v25 }
 0x283   : > { %v3469_v16 = vpop.f32.mrf.mxu0 }
 0x284   : > { %v3470_v24 = vadd.f32 %v3469_v16, %v5813_v54  ;;  %v3540_v61 = vpop.f32.mrf.mxu1 }
 0x285   : > { %v3541_v30 = vadd.f32 %v3540_v61, %v5813_v54  ;;  %v3471_v18 = vpop.f32.mrf.mxu0 }
 0x286   : > { %3573 = vst [vmem:[%s5819_s29 + $0xe0] sm:$0xff] %v3470_v24  ;;  %v3472_v42 = vadd.f32 %v3471_v18, %v5813_v54  ;;  %v3542_v58 = vpop.f32.mrf.mxu1 }
 0x287   : > { %3575 = vst [vmem:[%s5819_s29 + $0xf0] sm:$0xff] %v3541_v30  ;;  %v3543_v60 = vadd.f32 %v3542_v58, %v5813_v54 }
 0x288   : > { %3574 = vst [vmem:[%s5819_s29 + $0xe8] sm:$0xff] %v3472_v42 }
 0x289   : > { %3576 = vst [vmem:[%s5819_s29 + $0xf8] sm:$0xff] %v3543_v60 }
 0x28a   : > { %4139 = shalt.err (!%p4136_p3)
}
 0x28b   : > { %s4140_s12 = scalar_lea.hbm %s5886_s13, 4096  ;;  %s4144_s25 = scalar_lea.hbm %s5935_s5, 8192 }
 0x28c   : > { %p4141_p5 = scmp.ne.s32.totalorder %s5886_s13, %s4140_s12  ;;  %p4145_p10 = scmp.lt.s32.totalorder %s5886_s13, %s5935_s5 }
 0x28d   : > { %p4146_p4 = scmp.lt.s32.totalorder %s4144_s25, %s4140_s12 }
 0x28e   : > { %p4142_p6 = pnand %p4141_p5, %p4293_p9 }
 0x28f   : > { %p4147_p13 = por %p4146_p4, %p4145_p10 }
 0x290   : > { %p4143_p7 = pneg %p4142_p6 }
 0x292   : > { %p4148_p8 = pnand %p4147_p13, %p4143_p7 }
 0x294   : > { %4151 = shalt.err (!%p4148_p8)
}
 0x295   : > { %3777 = dma.vmem_to_hbm [thread:$0]  (%p4293_p9), %s3595_s10, 4096, %s5886_s13, %s3578_s21  }
 0x296 PF: > { %s3606_s9 = sand.u32 1, %s4186_s18   ;;  %p6062_p11 = scmp.ne.s32.totalorder %s5945_s8, 0 }
 0x297   : > { %p6063_p12 = scmp.ge.s32.totalorder %s4206_s23, 2  ;;  %s3607_s11 = scalar_lea.sflag [#allocation4], %s3606_s9 }
 0x299   : > { %p3784_p0 = pnand %p6063_p12, %p6062_p11 }
 0x29b   : > { %p3785_p1 = pneg %p3784_p0 }
 0x29d   : > { %4181 = dma.done.wait (%p3785_p1), %s3607_s11, 4096  }
 0x29e   : > { %4183 = vsyncadd (%p3785_p1), %s3607_s11, 4294963200  ;;  %s21_s23 = sadd.s32 1, %s4206_s23   ;;  %s6064_s18 = smov %s4190_s19 }
 0x29f   : > { %p18_p2 = scmp.ge.s32.totalorder %s21_s23, 4   ;;  %s6065_s19 = smov %s4194_s20 }
 0x2a0   : > { %s6066_s20 = smov %s4298_s7  ;;  %s6067_s21 = smov %s4202_s22 }
 0x2a1   : > { %s6068_s22 = smov %s6070_s26  ;;  %20 = sbr.rel (!%p18_p2) target bundleno = 6 (0x6), region = 85 }
 0x2a6   :  { %3612 = vsyncpa [#allocation3], 1 }
 0x2a7   :  { %3614 = vsyncpa [#allocation3 + $0x1], 1 }
 0x2a8   :  { %3615 = vsyncpa [#allocation4], 1 }
 0x2a9   :  { %3617 = vsyncpa [#allocation4 + $0x1], 1 }

</bundles_post_ra>
